<compile_context>
chip_gen: v7x
topology: tpu7x:2x2x1
jax: 0.10.0
libtpu: 0.0.40
codegen_flags: <defaults>
</compile_context>

<pallas_src>
import functools

import jax
import jax.numpy as jnp
from jax.experimental import pallas as pl
from jax.experimental.pallas import tpu as pltpu


_EPS = 1e-5
_SLOPE = 0.2


def _leaky_relu(x):
    return jnp.where(x >= 0.0, x, _SLOPE * x)


# ----------------------------------------------------------------------------
# Stage 1: conv0 + bias + LeakyReLU + conv1; emit per-tile partial sum / sumsq
# of the conv1 output per channel (BatchNorm batch statistics).
# ----------------------------------------------------------------------------
def _stats_kernel(x_ref, w0_ref, b0_ref, w1_ref, part_ref):
    x = x_ref[0]                                                    # (C_in, tp) f32
    h1 = jnp.dot(w0_ref[...], x,
                 preferred_element_type=jnp.float32) + b0_ref[...]  # (ndf, tp)
    h1 = _leaky_relu(h1)
    h2 = jnp.dot(w1_ref[...], h1.astype(w1_ref.dtype),
                 preferred_element_type=jnp.float32)                # (2*ndf, tp) f32
    s = jnp.sum(h2, axis=1, keepdims=True)                          # (2*ndf, 1)
    ss = jnp.sum(h2 * h2, axis=1, keepdims=True)                    # (2*ndf, 1)
    part_ref[...] = jnp.concatenate([s, ss], axis=1)[None, None, :, :]


# ----------------------------------------------------------------------------
# Stage 2: recompute conv0+LReLU+conv1, apply folded BatchNorm (scale/shift),
# LeakyReLU, conv2, sigmoid.  Output block is lane-dense (1, 1, tp).
# ----------------------------------------------------------------------------
def _apply_kernel(x_ref, w0_ref, b0_ref, w1_ref, scale_ref, shift_ref, w2_ref,
                  out_ref):
    x = x_ref[0]                                                    # (C_in, tp)
    h1 = jnp.dot(w0_ref[...], x,
                 preferred_element_type=jnp.float32) + b0_ref[...]
    h1 = _leaky_relu(h1)
    h2 = jnp.dot(w1_ref[...], h1.astype(w1_ref.dtype),
                 preferred_element_type=jnp.float32)                # (2*ndf, tp)
    h = _leaky_relu(h2 * scale_ref[...] + shift_ref[...])           # BatchNorm + LReLU
    o = jnp.dot(w2_ref[...], h.astype(w2_ref.dtype),
                preferred_element_type=jnp.float32)                 # (1, tp)
    out_ref[...] = jax.nn.sigmoid(o)[None, :, :]                    # EUP exp/recip


def pixel_discriminator_forward(x_nchw, params, *, tp=2048):
    """Forward pass of PixelDiscriminator.

    x_nchw: (N, C_in, H, W) float32
    params: w0 (ndf, C_in), b0 (ndf,), w1 (2*ndf, ndf), w2 (1, 2*ndf),
            gamma (2*ndf,), beta (2*ndf,)   [conv weights = torch (out,in,1,1) squeezed]
    returns (N, 1, H, W) float32 in [0, 1]
    """
    w0 = params["w0"].astype(jnp.float32)                     # (ndf, C_in)
    b0 = params["b0"].astype(jnp.float32).reshape(-1, 1)      # (ndf, 1)
    w1 = params["w1"].astype(jnp.bfloat16)                    # (2*ndf, ndf)
    w2 = params["w2"].astype(jnp.bfloat16)                    # (1, 2*ndf)
    gamma = params["gamma"].astype(jnp.float32).reshape(-1, 1)
    beta = params["beta"].astype(jnp.float32).reshape(-1, 1)

    N, C_in, H, W = x_nchw.shape
    ndf = w0.shape[0]
    ndf2 = w1.shape[0]
    HW = H * W

    tp = min(tp, HW)
    assert HW % tp == 0, "H*W must be divisible by the pixel tile"
    assert tp % 128 == 0 or tp == HW, "pixel tile must be lane-aligned"
    num_tiles = HW // tp

    # (N, C, H, W) -> (N, C, H*W): a pure view, no transpose / relayout.
    x3 = x_nchw.astype(jnp.float32).reshape(N, C_in, HW)

    grid = (N, num_tiles)
    cparams = pltpu.CompilerParams(
        dimension_semantics=("parallel", "parallel"),
        vmem_limit_bytes=32 * 1024 * 1024)

    # ---- stage 1: per-tile partial BN statistics --------------------------
    partials = pl.pallas_call(
        _stats_kernel,
        out_shape=jax.ShapeDtypeStruct((N, num_tiles, ndf2, 2), jnp.float32),
        grid_spec=pltpu.PrefetchScalarGridSpec(
            num_scalar_prefetch=0,
            grid=grid,
            in_specs=[
                pl.BlockSpec((1, C_in, tp), lambda n, j: (n, 0, j)),
                pl.BlockSpec((ndf, C_in), lambda n, j: (0, 0)),
                pl.BlockSpec((ndf, 1), lambda n, j: (0, 0)),
                pl.BlockSpec((ndf2, ndf), lambda n, j: (0, 0)),
            ],
            out_specs=pl.BlockSpec((1, 1, ndf2, 2), lambda n, j: (n, j, 0, 0)),
        ),
        compiler_params=cparams,
    )(x3, w0, b0, w1)

    # ---- BatchNorm statistics -> folded scale/shift (cheap glue) ----------
    tot = jnp.sum(partials, axis=(0, 1))                 # (2*ndf, 2)
    p_count = jnp.float32(N * HW)
    mean = tot[:, :1] / p_count
    var = jnp.maximum(tot[:, 1:] / p_count - mean * mean, 0.0)   # biased var, clamped
    scale = gamma * jax.lax.rsqrt(var + _EPS)            # (2*ndf, 1)
    shift = beta - mean * scale                          # (2*ndf, 1)

    # ---- stage 2: recompute + BN + LeakyReLU + conv2 + sigmoid -------------
    out = pl.pallas_call(
        _apply_kernel,
        out_shape=jax.ShapeDtypeStruct((N, 1, HW), jnp.float32),
        grid_spec=pltpu.PrefetchScalarGridSpec(
            num_scalar_prefetch=0,
            grid=grid,
            in_specs=[
                pl.BlockSpec((1, C_in, tp), lambda n, j: (n, 0, j)),
                pl.BlockSpec((ndf, C_in), lambda n, j: (0, 0)),
                pl.BlockSpec((ndf, 1), lambda n, j: (0, 0)),
                pl.BlockSpec((ndf2, ndf), lambda n, j: (0, 0)),
                pl.BlockSpec((ndf2, 1), lambda n, j: (0, 0)),
                pl.BlockSpec((ndf2, 1), lambda n, j: (0, 0)),
                pl.BlockSpec((1, ndf2), lambda n, j: (0, 0)),
            ],
            out_specs=pl.BlockSpec((1, 1, tp), lambda n, j: (n, 0, j)),
        ),
        compiler_params=cparams,
    )(x3, w0, b0, w1, scale, shift, w2)

    # (N, 1, H*W) -> (N, 1, H, W): pure view.
    return out.reshape(N, 1, H, W)


def init_params(key, input_nc, ndf=64):
    """Deterministic parameter init (shapes match torch Conv2d (out,in,1,1) squeezed)."""
    k0, kb, k1, k2 = jax.random.split(key, 4)
    w0 = jax.random.normal(k0, (ndf, input_nc), jnp.float32) * 0.1
    b0 = jax.random.normal(kb, (ndf,), jnp.float32) * 0.1
    w1 = jax.random.normal(k1, (2 * ndf, ndf), jnp.float32) * 0.05
    w2 = jax.random.normal(k2, (1, 2 * ndf), jnp.float32) * 0.05
    gamma = jnp.ones((2 * ndf,), jnp.float32)   # BatchNorm2d default affine init
    beta = jnp.zeros((2 * ndf,), jnp.float32)
    return {"w0": w0, "b0": b0, "w1": w1, "w2": w2, "gamma": gamma, "beta": beta}


if __name__ == "__main__":
    key = jax.random.PRNGKey(0)
    kx, kp = jax.random.split(key)

    N, C_in, H, W = 2, 4, 16, 16
    ndf = 64

    x = jax.random.normal(kx, (N, C_in, H, W), jnp.float32)
    params = init_params(kp, C_in, ndf)

    fwd = jax.jit(functools.partial(pixel_discriminator_forward, tp=2048))
    out = fwd(x, params)
    jax.block_until_ready(out)

    assert out.shape == (N, 1, H, W), out.shape
    assert bool(jnp.all(jnp.isfinite(out)))
    assert bool(jnp.all((out >= 0.0) & (out <= 1.0)))   # sigmoid range
    print("KERNEL_OK")
</pallas_src>

<mosaic_0001>
module attributes {stable_mosaic.version = 11 : i64} {
  func.func @_stats_kernel(%arg0: i32, %arg1: i32, %arg2: memref<1x4x256xf32, #tpu.memory_space<vmem>>, %arg3: memref<64x4xf32, #tpu.memory_space<vmem>>, %arg4: memref<64x1xf32, #tpu.memory_space<vmem>>, %arg5: memref<128x64xbf16, #tpu.memory_space<vmem>>, %arg6: memref<1x1x128x2xf32, #tpu.memory_space<vmem>>) attributes {dimension_semantics = [#tpu.dimension_semantics<parallel>, #tpu.dimension_semantics<parallel>], iteration_bounds = array<i64: 2, 1>, scalar_prefetch = 0 : i64, scratch_operands = 0 : i64, tpu.core_type = #tpu.core_type<tc>, window_params = [{transform_indices = @transform_0, window_bounds = array<i64: 1, 4, 256>}, {pipeline_mode = #tpu.pipeline_mode<synchronous>, transform_indices = @transform_1, window_bounds = array<i64: 64, 4>}, {pipeline_mode = #tpu.pipeline_mode<synchronous>, transform_indices = @transform_2, window_bounds = array<i64: 64, 1>}, {pipeline_mode = #tpu.pipeline_mode<synchronous>, transform_indices = @transform_3, window_bounds = array<i64: 128, 64>}, {transform_indices = @transform_4, window_bounds = array<i64: 1, 1, 128, 2>}]} {
    %c0 = arith.constant 0 : index
    %c0_0 = arith.constant 0 : index
    %c0_1 = arith.constant 0 : index
    %0 = vector.load %arg2[%c0, %c0_0, %c0_1] : memref<1x4x256xf32, #tpu.memory_space<vmem>>, vector<1x4x256xf32>
    %1 = vector.shape_cast %0 : vector<1x4x256xf32> to vector<4x256xf32>
    %c0_2 = arith.constant 0 : index
    %c0_3 = arith.constant 0 : index
    %2 = vector.load %arg3[%c0_2, %c0_3] : memref<64x4xf32, #tpu.memory_space<vmem>>, vector<64x4xf32>
    %cst = arith.constant dense<0.000000e+00> : vector<64x256xf32>
    %3 = tpu.matmul %2, %1, %cst {dimension_numbers = #tpu.dot_dimension_numbers<[1], [0], [0], [1], [0, 0, 1, 1], [], []>} : vector<64x4xf32>, vector<4x256xf32>, vector<64x256xf32> -> vector<64x256xf32>
    %c0_4 = arith.constant 0 : index
    %c0_5 = arith.constant 0 : index
    %4 = vector.load %arg4[%c0_4, %c0_5] : memref<64x1xf32, #tpu.memory_space<vmem>>, vector<64x1xf32>
    %5 = vector.broadcast %4 : vector<64x1xf32> to vector<64x256xf32>
    %6 = arith.addf %3, %5 : vector<64x256xf32>
    %cst_6 = arith.constant 0.000000e+00 : f32
    %7 = vector.broadcast %cst_6 : f32 to vector<64x256xf32>
    %8 = arith.cmpf oge, %6, %7 : vector<64x256xf32>
    %cst_7 = arith.constant 2.000000e-01 : f32
    %9 = vector.broadcast %cst_7 : f32 to vector<64x256xf32>
    %10 = arith.mulf %9, %6 : vector<64x256xf32>
    %11 = arith.select %8, %6, %10 : vector<64x256xi1>, vector<64x256xf32>
    %c0_8 = arith.constant 0 : index
    %c0_9 = arith.constant 0 : index
    %12 = vector.load %arg5[%c0_8, %c0_9] : memref<128x64xbf16, #tpu.memory_space<vmem>>, vector<128x64xbf16>
    %13 = arith.truncf %11 : vector<64x256xf32> to vector<64x256xbf16>
    %cst_10 = arith.constant dense<0.000000e+00> : vector<128x256xf32>
    %14 = tpu.matmul %12, %13, %cst_10 {dimension_numbers = #tpu.dot_dimension_numbers<[1], [0], [0], [1], [0, 0, 1, 1], [], []>} : vector<128x64xbf16>, vector<64x256xbf16>, vector<128x256xf32> -> vector<128x256xf32>
    %cst_11 = arith.constant dense<0.000000e+00> : vector<128xf32>
    %15 = vector.multi_reduction <add>, %14, %cst_11 [1] : vector<128x256xf32> to vector<128xf32>
    %16 = vector.shape_cast %15 : vector<128xf32> to vector<128x1xf32>
    %17 = arith.mulf %14, %14 : vector<128x256xf32>
    %cst_12 = arith.constant dense<0.000000e+00> : vector<128xf32>
    %18 = vector.multi_reduction <add>, %17, %cst_12 [1] : vector<128x256xf32> to vector<128xf32>
    %19 = vector.shape_cast %18 : vector<128xf32> to vector<128x1xf32>
    %20 = tpu.concatenate %16, %19 in 1 : vector<128x1xf32>, vector<128x1xf32> -> vector<128x2xf32>
    %21 = vector.shape_cast %20 : vector<128x2xf32> to vector<1x1x128x2xf32>
    %c0_13 = arith.constant 0 : index
    %c0_14 = arith.constant 0 : index
    %c0_15 = arith.constant 0 : index
    %c0_16 = arith.constant 0 : index
    %22 = vector.load %arg6[%c0_13, %c0_14, %c0_15, %c0_16] : memref<1x1x128x2xf32, #tpu.memory_space<vmem>>, vector<1x1x128x2xf32>
    tpu.vector_store %arg6[%c0_13, %c0_14, %c0_15, %c0_16], %21 {strides = array<i32>} : memref<1x1x128x2xf32, #tpu.memory_space<vmem>>, vector<1x1x128x2xf32>,
    return
  }
  func.func @transform_0(%arg0: i32, %arg1: i32) -> (i32, i32, i32) {
    %c0_i32 = arith.constant 0 : i32
    %c0_i32_0 = arith.constant 0 : i32
    return %arg0, %c0_i32, %arg1 : i32, i32, i32
  }
  func.func @transform_1(%arg0: i32, %arg1: i32) -> (i32, i32) {
    %c0_i32 = arith.constant 0 : i32
    %c0_i32_0 = arith.constant 0 : i32
    %c0_i32_1 = arith.constant 0 : i32
    return %c0_i32, %c0_i32_0 : i32, i32
  }
  func.func @transform_2(%arg0: i32, %arg1: i32) -> (i32, i32) {
    %c0_i32 = arith.constant 0 : i32
    %c0_i32_0 = arith.constant 0 : i32
    %c0_i32_1 = arith.constant 0 : i32
    return %c0_i32, %c0_i32_0 : i32, i32
  }
  func.func @transform_3(%arg0: i32, %arg1: i32) -> (i32, i32) {
    %c0_i32 = arith.constant 0 : i32
    %c0_i32_0 = arith.constant 0 : i32
    %c0_i32_1 = arith.constant 0 : i32
    return %c0_i32, %c0_i32_0 : i32, i32
  }
  func.func @transform_4(%arg0: i32, %arg1: i32) -> (i32, i32, i32, i32) {
    %c0_i32 = arith.constant 0 : i32
    %c0_i32_0 = arith.constant 0 : i32
    %c0_i32_1 = arith.constant 0 : i32
    return %arg0, %arg1, %c0_i32, %c0_i32_0 : i32, i32, i32, i32
  }
}

module attributes {stable_mosaic.version = 11 : i64} {
  func.func @_apply_kernel(%arg0: i32, %arg1: i32, %arg2: memref<1x4x256xf32, #tpu.memory_space<vmem>>, %arg3: memref<64x4xf32, #tpu.memory_space<vmem>>, %arg4: memref<64x1xf32, #tpu.memory_space<vmem>>, %arg5: memref<128x64xbf16, #tpu.memory_space<vmem>>, %arg6: memref<128x1xf32, #tpu.memory_space<vmem>>, %arg7: memref<128x1xf32, #tpu.memory_space<vmem>>, %arg8: memref<1x128xbf16, #tpu.memory_space<vmem>>, %arg9: memref<1x1x256xf32, #tpu.memory_space<vmem>>) attributes {dimension_semantics = [#tpu.dimension_semantics<parallel>, #tpu.dimension_semantics<parallel>], iteration_bounds = array<i64: 2, 1>, scalar_prefetch = 0 : i64, scratch_operands = 0 : i64, tpu.core_type = #tpu.core_type<tc>, window_params = [{transform_indices = @transform_0, window_bounds = array<i64: 1, 4, 256>}, {pipeline_mode = #tpu.pipeline_mode<synchronous>, transform_indices = @transform_1, window_bounds = array<i64: 64, 4>}, {pipeline_mode = #tpu.pipeline_mode<synchronous>, transform_indices = @transform_2, window_bounds = array<i64: 64, 1>}, {pipeline_mode = #tpu.pipeline_mode<synchronous>, transform_indices = @transform_3, window_bounds = array<i64: 128, 64>}, {pipeline_mode = #tpu.pipeline_mode<synchronous>, transform_indices = @transform_4, window_bounds = array<i64: 128, 1>}, {pipeline_mode = #tpu.pipeline_mode<synchronous>, transform_indices = @transform_5, window_bounds = array<i64: 128, 1>}, {pipeline_mode = #tpu.pipeline_mode<synchronous>, transform_indices = @transform_6, window_bounds = array<i64: 1, 128>}, {transform_indices = @transform_7, window_bounds = array<i64: 1, 1, 256>}]} {
    %c0 = arith.constant 0 : index
    %c0_0 = arith.constant 0 : index
    %c0_1 = arith.constant 0 : index
    %0 = vector.load %arg2[%c0, %c0_0, %c0_1] : memref<1x4x256xf32, #tpu.memory_space<vmem>>, vector<1x4x256xf32>
    %1 = vector.shape_cast %0 : vector<1x4x256xf32> to vector<4x256xf32>
    %c0_2 = arith.constant 0 : index
    %c0_3 = arith.constant 0 : index
    %2 = vector.load %arg3[%c0_2, %c0_3] : memref<64x4xf32, #tpu.memory_space<vmem>>, vector<64x4xf32>
    %cst = arith.constant dense<0.000000e+00> : vector<64x256xf32>
    %3 = tpu.matmul %2, %1, %cst {dimension_numbers = #tpu.dot_dimension_numbers<[1], [0], [0], [1], [0, 0, 1, 1], [], []>} : vector<64x4xf32>, vector<4x256xf32>, vector<64x256xf32> -> vector<64x256xf32>
    %c0_4 = arith.constant 0 : index
    %c0_5 = arith.constant 0 : index
    %4 = vector.load %arg4[%c0_4, %c0_5] : memref<64x1xf32, #tpu.memory_space<vmem>>, vector<64x1xf32>
    %5 = vector.broadcast %4 : vector<64x1xf32> to vector<64x256xf32>
    %6 = arith.addf %3, %5 : vector<64x256xf32>
    %cst_6 = arith.constant 0.000000e+00 : f32
    %7 = vector.broadcast %cst_6 : f32 to vector<64x256xf32>
    %8 = arith.cmpf oge, %6, %7 : vector<64x256xf32>
    %cst_7 = arith.constant 2.000000e-01 : f32
    %9 = vector.broadcast %cst_7 : f32 to vector<64x256xf32>
    %10 = arith.mulf %9, %6 : vector<64x256xf32>
    %11 = arith.select %8, %6, %10 : vector<64x256xi1>, vector<64x256xf32>
    %c0_8 = arith.constant 0 : index
    %c0_9 = arith.constant 0 : index
    %12 = vector.load %arg5[%c0_8, %c0_9] : memref<128x64xbf16, #tpu.memory_space<vmem>>, vector<128x64xbf16>
    %13 = arith.truncf %11 : vector<64x256xf32> to vector<64x256xbf16>
    %cst_10 = arith.constant dense<0.000000e+00> : vector<128x256xf32>
    %14 = tpu.matmul %12, %13, %cst_10 {dimension_numbers = #tpu.dot_dimension_numbers<[1], [0], [0], [1], [0, 0, 1, 1], [], []>} : vector<128x64xbf16>, vector<64x256xbf16>, vector<128x256xf32> -> vector<128x256xf32>
    %c0_11 = arith.constant 0 : index
    %c0_12 = arith.constant 0 : index
    %15 = vector.load %arg6[%c0_11, %c0_12] : memref<128x1xf32, #tpu.memory_space<vmem>>, vector<128x1xf32>
    %16 = vector.broadcast %15 : vector<128x1xf32> to vector<128x256xf32>
    %17 = arith.mulf %14, %16 : vector<128x256xf32>
    %c0_13 = arith.constant 0 : index
    %c0_14 = arith.constant 0 : index
    %18 = vector.load %arg7[%c0_13, %c0_14] : memref<128x1xf32, #tpu.memory_space<vmem>>, vector<128x1xf32>
    %19 = vector.broadcast %18 : vector<128x1xf32> to vector<128x256xf32>
    %20 = arith.addf %17, %19 : vector<128x256xf32>
    %cst_15 = arith.constant 0.000000e+00 : f32
    %21 = vector.broadcast %cst_15 : f32 to vector<128x256xf32>
    %22 = arith.cmpf oge, %20, %21 : vector<128x256xf32>
    %cst_16 = arith.constant 2.000000e-01 : f32
    %23 = vector.broadcast %cst_16 : f32 to vector<128x256xf32>
    %24 = arith.mulf %23, %20 : vector<128x256xf32>
    %25 = arith.select %22, %20, %24 : vector<128x256xi1>, vector<128x256xf32>
    %c0_17 = arith.constant 0 : index
    %c0_18 = arith.constant 0 : index
    %26 = vector.load %arg8[%c0_17, %c0_18] : memref<1x128xbf16, #tpu.memory_space<vmem>>, vector<1x128xbf16>
    %27 = arith.truncf %25 : vector<128x256xf32> to vector<128x256xbf16>
    %cst_19 = arith.constant dense<0.000000e+00> : vector<1x256xf32>
    %28 = tpu.matmul %26, %27, %cst_19 {dimension_numbers = #tpu.dot_dimension_numbers<[1], [0], [0], [1], [0, 0, 1, 1], [], []>} : vector<1x128xbf16>, vector<128x256xbf16>, vector<1x256xf32> -> vector<1x256xf32>
    %29 = arith.negf %28 : vector<1x256xf32>
    %30 = math.exp %29 : vector<1x256xf32>
    %cst_20 = arith.constant 1.000000e+00 : f32
    %31 = vector.broadcast %cst_20 : f32 to vector<1x256xf32>
    %32 = arith.addf %31, %30 : vector<1x256xf32>
    %33 = arith.divf %31, %32 : vector<1x256xf32>
    %34 = vector.shape_cast %33 : vector<1x256xf32> to vector<1x1x256xf32>
    %c0_21 = arith.constant 0 : index
    %c0_22 = arith.constant 0 : index
    %c0_23 = arith.constant 0 : index
    %35 = vector.load %arg9[%c0_21, %c0_22, %c0_23] : memref<1x1x256xf32, #tpu.memory_space<vmem>>, vector<1x1x256xf32>
    tpu.vector_store %arg9[%c0_21, %c0_22, %c0_23], %34 {strides = array<i32>} : memref<1x1x256xf32, #tpu.memory_space<vmem>>, vector<1x1x256xf32>,
    return
  }
  func.func @transform_0(%arg0: i32, %arg1: i32) -> (i32, i32, i32) {
    %c0_i32 = arith.constant 0 : i32
    %c0_i32_0 = arith.constant 0 : i32
    return %arg0, %c0_i32, %arg1 : i32, i32, i32
  }
  func.func @transform_1(%arg0: i32, %arg1: i32) -> (i32, i32) {
    %c0_i32 = arith.constant 0 : i32
    %c0_i32_0 = arith.constant 0 : i32
    %c0_i32_1 = arith.constant 0 : i32
    return %c0_i32, %c0_i32_0 : i32, i32
  }
  func.func @transform_2(%arg0: i32, %arg1: i32) -> (i32, i32) {
    %c0_i32 = arith.constant 0 : i32
    %c0_i32_0 = arith.constant 0 : i32
    %c0_i32_1 = arith.constant 0 : i32
    return %c0_i32, %c0_i32_0 : i32, i32
  }
  func.func @transform_3(%arg0: i32, %arg1: i32) -> (i32, i32) {
    %c0_i32 = arith.constant 0 : i32
    %c0_i32_0 = arith.constant 0 : i32
    %c0_i32_1 = arith.constant 0 : i32
    return %c0_i32, %c0_i32_0 : i32, i32
  }
  func.func @transform_4(%arg0: i32, %arg1: i32) -> (i32, i32) {
    %c0_i32 = arith.constant 0 : i32
    %c0_i32_0 = arith.constant 0 : i32
    %c0_i32_1 = arith.constant 0 : i32
    return %c0_i32, %c0_i32_0 : i32, i32
  }
  func.func @transform_5(%arg0: i32, %arg1: i32) -> (i32, i32) {
    %c0_i32 = arith.constant 0 : i32
    %c0_i32_0 = arith.constant 0 : i32
    %c0_i32_1 = arith.constant 0 : i32
    return %c0_i32, %c0_i32_0 : i32, i32
  }
  func.func @transform_6(%arg0: i32, %arg1: i32) -> (i32, i32) {
    %c0_i32 = arith.constant 0 : i32
    %c0_i32_0 = arith.constant 0 : i32
    %c0_i32_1 = arith.constant 0 : i32
    return %c0_i32, %c0_i32_0 : i32, i32
  }
  func.func @transform_7(%arg0: i32, %arg1: i32) -> (i32, i32, i32) {
    %c0_i32 = arith.constant 0 : i32
    %c0_i32_0 = arith.constant 0 : i32
    return %arg0, %c0_i32, %arg1 : i32, i32, i32
  }
}

</mosaic_0001>

<bundles_post_ra>
// kernel: pixel_discriminator_forward.2
= control target key start
LH: loop header
LB: loop body
LE: loop exit
PB: predicated region body
PF: predicated region fallthrough
CT: control target
= control target key end

     0   :  { %s1075_s15 = smov 0   ;;  %s1077_s16 = smov 0   ;;  %s1260_s0 = inlined_call_operand.vmem [shape: f32[2,4,256], index: 0, kind: input, shape index: {}]   ;;  %s1261_s1 = inlined_call_operand.vmem [shape: f32[64,4], index: 1, kind: input, shape index: {}]   ;;  %s1262_s2 = inlined_call_operand.vmem [shape: f32[64,1], index: 2, kind: input, shape index: {}]   ;;  %s1263_s3 = inlined_call_operand.vmem [shape: bf16[128,64], index: 3, kind: input, shape index: {}]   ;;  %s1264_s4 = inlined_call_operand.vmem [shape: f32[2,1,128,2], index: 4, kind: output, shape index: {}]  }
   0x1   :  { %s1079_s17 = smov 0  }
   0x2 LB: > { %s26_s18 = sadd.s32 1, %s1042_s16  ;;  %p944_p0 = scmp.ge.s32.totalorder %s1046_s17, 1  ;;  %s1046_s17 = sphi %s1079_s17, %s14_s17   ;;  %s1042_s16 = sphi %s1077_s16, %s1266_s16   ;;  %s1038_s15 = sphi %s1075_s15, %s1265_s15  }
   0x3   : > { %p28_p1 = scmp.ge.s32.totalorder %s26_s18, 2  ;;  %p183_p2 = scmp.lt.s32.totalorder %s1046_s17, 3 }
   0x5   : > { %s1268_s18 = smov (%p28_p1, %s26_s18), 0  ;;  %p184_p3 = pnand %p944_p0, %p183_p2 }
   0x6   : > { %p218_p4 = scmp.lt.s32.totalorder (!%p184_p3), %s1038_s15, 1  ;;  %v1048_v0 = vmov (!%p184_p3), 0.0   ;;  %v1049_v1 = vmov (!%p184_p3), 0   ;;  %v246_v2 = vld [vmem:[%s1262_s2] sm:$0xff] (!%p184_p3)  ;;  %v248_v3 = vld [vmem:[%s1262_s2 + $0x10] sm:$0xff] (!%p184_p3)  ;;  %vm321_vm0 = vcmask (!%p184_p3), 1043456  }
   0x7   : > { %187 = sbr.rel (%p184_p3) target bundleno = 697 (0x2b9), region = 36  ;;  %390 = vmatprep.mubr.f32.mxu0 (!%p184_p3), %v1048_v0  ;;  %1013 = vset.pattern.permute.xlu0 (!%p184_p3), %v1049_v1  ;;  %v247_v4 = vld [vmem:[%s1262_s2 + $0x8] sm:$0xff] (!%p184_p3)  ;;  %v249_v5 = vld [vmem:[%s1262_s2 + $0x18] sm:$0xff] (!%p184_p3)  ;;  %v238_v7 = vld [vmem:[%s1261_s1] sm:$0xff] (!%p184_p3)  ;;  %vm296_vm1 = vcmask (!%p184_p3), 31744  }
   0x8   : > { %1014 = vset.pattern.permute.xlu1 (!%p184_p3), %v1049_v1  ;;  %628 = vmatprep.mubr.bf16.mxu1 (!%p184_p3), %v1049_v1  ;;  %v250_v9 = vld [vmem:[%s1262_s2 + $0x20] sm:$0xff] (!%p184_p3)  ;;  %v251_v10 = vld [vmem:[%s1262_s2 + $0x28] sm:$0xff] (!%p184_p3)  ;;  %v252_v12 = vld [vmem:[%s1262_s2 + $0x30] sm:$0xff] (!%p184_p3) }
   0x9   : > { %256 = vperm.xlu0 (!%p184_p3), %1013, %v246_v2   ;;  %266 = vperm.xlu1 (!%p184_p3), %1014, %v248_v3   ;;  %v239_v11 = vld [vmem:[%s1261_s1 + $0x8] sm:$0xff] (!%p184_p3)  ;;  %v253_v13 = vld [vmem:[%s1262_s2 + $0x38] sm:$0xff] (!%p184_p3)  ;;  %v240_v14 = vld [vmem:[%s1261_s1 + $0x10] sm:$0xff] (!%p184_p3) }
   0xa   : > { %v241_v15 = vld [vmem:[%s1261_s1 + $0x18] sm:$0xff] (!%p184_p3)  ;;  %v242_v16 = vld [vmem:[%s1261_s1 + $0x20] sm:$0xff] (!%p184_p3)  ;;  %v243_v17 = vld [vmem:[%s1261_s1 + $0x28] sm:$0xff] (!%p184_p3) }
   0xb   : > { %v244_v18 = vld [vmem:[%s1261_s1 + $0x30] sm:$0xff] (!%p184_p3)  ;;  %v245_v19 = vld [vmem:[%s1261_s1 + $0x38] sm:$0xff] (!%p184_p3) }
   0xd   : > { %261 = vperm.xlu0 (!%p184_p3), %1013, %v247_v4   ;;  %271 = vperm.xlu1 (!%p184_p3), %1014, %v249_v5  }
   0xe   : > { %s1270_s15 = smov (!%p218_p4, %s1038_s15), 1 }
   0xf   : > { %s977_s23 = sshll.u32 %s1270_s15, 3  ;;  %s978_s27 = sshll.u32 %s1270_s15, 7 }
  0x10   : > { %s225_s26 = scalar_lea.vmem %s1260_s0, %s977_s23  ;;  %s1201_s30 = scalar_lea.vmem %s1264_s4, %s978_s27 }
  0x11   : > { %v237_v6 = vld [vmem:[%s225_s26] sm:$0xff]  ;;  %276 = vperm.xlu0 %1013, %v250_v9   ;;  %281 = vperm.xlu1 %1014, %v251_v10  }
  0x12   : > { %v295_v8 = vcombine.high %v237_v6, %v237_v6 }
  0x14   : > { %949 = vmatprep.subr.msk.mxu0 %vm321_vm0, %v295_v8 }
  0x15   : > { %950 = vmatpush1.msk.msra.mxu0 %vm321_vm0, %v237_v6  ;;  %286 = vperm.xlu0 %1013, %v252_v12  }
  0x16   : > { %951 = vmatmul.mubr.msk.f32.vlgmr.msra.gmra.mrb[0].mxu0 %vm296_vm1, %v238_v7  ;;  %291 = vperm.xlu1 %1014, %v253_v13  }
  0x17   : > { %396 = vmatprep.mubr.f32.mxu0 %v1048_v0 }
  0x1a   : > { %952 = vmatmul.mubr.msk.f32.gmra.mrb[2].mxu0 %vm296_vm1, %v239_v11 }
  0x1b   : > { %402 = vmatprep.mubr.f32.mxu0 %v1048_v0 }
  0x1e   : > { %953 = vmatmul.mubr.msk.f32.gmra.mrb[4].mxu0 %vm296_vm1, %v240_v14 }
  0x1f   : > { %408 = vmatprep.mubr.f32.mxu0 %v1048_v0 }
  0x22   : > { %954 = vmatmul.mubr.msk.f32.gmra.mrb[6].mxu0 %vm296_vm1, %v241_v15 }
  0x23   : > { %414 = vmatprep.mubr.f32.mxu0 %v1048_v0 }
  0x26   : > { %955 = vmatmul.mubr.msk.f32.gmra.mrb[8].mxu0 %vm296_vm1, %v242_v16 }
  0x27   : > { %420 = vmatprep.mubr.f32.mxu0 %v1048_v0 }
  0x2a   : > { %956 = vmatmul.mubr.msk.f32.gmra.mrb[10].mxu0 %vm296_vm1, %v243_v17 }
  0x2b   : > { %426 = vmatprep.mubr.f32.mxu0 %v1048_v0 }
  0x2e   : > { %957 = vmatmul.mubr.msk.f32.gmra.mrb[12].mxu0 %vm296_vm1, %v244_v18 }
  0x2f   : > { %432 = vmatprep.mubr.f32.mxu0 %v1048_v0 }
  0x32   : > { %958 = vmatmul.mubr.msk.f32.gmra.mrb[14].mxu0 %vm296_vm1, %v245_v19 }
  0x33   : > { %608 = vmatprep.mubr.bf16.mxu0 %v1049_v1 }
  0x88   : > { %v257_v20 = vpop.permute.xlu0 %256  ;;  %v267_v30 = vpop.permute.xlu1 %266 }
  0x8c   : > { %v262_v24 = vpop.permute.xlu0 %261  ;;  %v272_v45 = vpop.permute.xlu1 %271 }
  0x90   : > { %v277_v53 = vpop.permute.xlu0 %276  ;;  %v282_v2 = vpop.permute.xlu1 %281 }
  0x94   : > { %v287_v10 = vpop.permute.xlu0 %286 }
  0xe9   : > { %v392_v21 = vpop.f32.mrb[0].mxu0 }
  0xea   : > { %v393_v22 = vadd.f32 %v392_v21, %v257_v20  ;;  %v394_v23 = vpop.f32.mrb[1].mxu0 }
  0xeb   : > { %v395_v25 = vadd.f32 %v394_v23, %v257_v20 }
  0xec   : > { %v455_v27 = vmul.f32 0.2, %v393_v22  ;;  %vm439_vm2 = vcmp.ge.f32.partialorder %v393_v22, 0.0 }
  0xed   : > { %v398_v26 = vpop.f32.mrb[2].mxu0  ;;  %v456_v31 = vmul.f32 0.2, %v395_v25  ;;  %vm440_vm3 = vcmp.ge.f32.partialorder %v395_v25, 0.0 }
  0xee   : > { %v399_v28 = vadd.f32 %v398_v26, %v262_v24  ;;  %v400_v29 = vpop.f32.mrb[3].mxu0  ;;  %v471_v36 = vsel %vm439_vm2, %v393_v22, %v455_v27  ;;  %v292_v22 = vpop.permute.xlu1 %291  ;;  %vm551_vm2 = vcmask 523264  }
  0xef   : > { %v401_v32 = vadd.f32 %v400_v29, %v262_v24  ;;  %v472_v42 = vsel %vm440_vm3, %v395_v25, %v456_v31  ;;  %vm817_vm3 = vcmask 7168  }
  0xf0   : > { %vm441_vm4 = vcmp.ge.f32.partialorder %v399_v28, 0.0  ;;  %v457_v33 = vmul.f32 0.2, %v399_v28 }
  0xf1   : > { %vm442_vm5 = vcmp.ge.f32.partialorder %v401_v32, 0.0  ;;  %v458_v34 = vmul.f32 0.2, %v401_v32  ;;  %v404_v35 = vpop.f32.mrb[4].mxu0 }
  0xf2   : > { %v473_v37 = vsel %vm441_vm4, %v399_v28, %v457_v33  ;;  %v405_v38 = vadd.f32 %v404_v35, %v267_v30  ;;  %v406_v39 = vpop.f32.mrb[5].mxu0  ;;  %vm834_vm4 = vcmask 15360  }
  0xf3   : > { %v503_v40 = vpack.c.bf16 %v473_v37, %v471_v36  ;;  %v407_v41 = vadd.f32 %v406_v39, %v267_v30  ;;  %v474_v43 = vsel %vm442_vm5, %v401_v32, %v458_v34  ;;  %v1016_v37 = vld [vmem:[%s1263_s3] sm:$0xff]   ;;  %v1018_v39 = vld [vmem:[%s1263_s3 + $0x8] sm:$0xff]  }
  0xf4   : > { %v504_v44 = vpack.c.bf16 %v474_v43, %v472_v42  ;;  %v459_v47 = vmul.f32 0.2, %v405_v38  ;;  %vm443_vm6 = vcmp.ge.f32.partialorder %v405_v38, 0.0  ;;  %v1021_v42 = vld [vmem:[%s1263_s3 + $0x28] sm:$0xff]   ;;  %v1022_v43 = vld [vmem:[%s1263_s3 + $0x30] sm:$0xff]  }
  0xf5   : > { %v410_v46 = vpop.f32.mrb[6].mxu0  ;;  %v460_v50 = vmul.f32 0.2, %v407_v41  ;;  %vm444_vm7 = vcmp.ge.f32.partialorder %v407_v41, 0.0 }
  0xf6   : > { %v411_v48 = vadd.f32 %v410_v46, %v272_v45  ;;  %v412_v49 = vpop.f32.mrb[7].mxu0  ;;  %576 = vmatprep.subr.bf16.mxu0 %v504_v44  ;;  %979 = vmatprep.subr.bf16.mxu1 %v504_v44  ;;  %v475_v56 = vsel %vm443_vm6, %v405_v38, %v459_v47  ;;  %v1017_v38 = vld [vmem:[%s1263_s3 + $0x10] sm:$0xff]   ;;  %v1023_v44 = vld [vmem:[%s1263_s3 + $0x38] sm:$0xff]  }
  0xf7   : > { %v413_v51 = vadd.f32 %v412_v49, %v272_v45  ;;  %577 = vmatpush1.bf16.msra.mxu0 %v503_v40  ;;  %983 = vmatpush1.bf16.msra.mxu1 %v503_v40  ;;  %v476_v62 = vsel %vm444_vm7, %v407_v41, %v460_v50  ;;  %v1019_v40 = vld [vmem:[%s1263_s3 + $0x18] sm:$0xff]   ;;  %v1020_v41 = vld [vmem:[%s1263_s3 + $0x20] sm:$0xff]  }
  0xf8   : > { %vm445_vm8 = vcmp.ge.f32.partialorder %v411_v48, 0.0  ;;  %v461_v52 = vmul.f32 0.2, %v411_v48 }
  0xf9   : > { %vm446_vm9 = vcmp.ge.f32.partialorder %v413_v51, 0.0  ;;  %v462_v54 = vmul.f32 0.2, %v413_v51  ;;  %v416_v55 = vpop.f32.mrb[8].mxu0 }
  0xfa   : > { %v477_v57 = vsel %vm445_vm8, %v411_v48, %v461_v52  ;;  %v417_v58 = vadd.f32 %v416_v55, %v277_v53  ;;  %v418_v59 = vpop.f32.mrb[9].mxu0 }
  0xfb   : > { %v505_v60 = vpack.c.bf16 %v477_v57, %v475_v56  ;;  %v419_v61 = vadd.f32 %v418_v59, %v277_v53  ;;  %v478_v63 = vsel %vm446_vm9, %v413_v51, %v462_v54 }
  0xfc   : > { %v506_v0 = vpack.c.bf16 %v478_v63, %v476_v62  ;;  %v463_v4 = vmul.f32 0.2, %v417_v58  ;;  %vm447_vm10 = vcmp.ge.f32.partialorder %v417_v58, 0.0 }
  0xfd   : > { %v422_v3 = vpop.f32.mrb[10].mxu0  ;;  %v464_v7 = vmul.f32 0.2, %v419_v61  ;;  %vm448_vm11 = vcmp.ge.f32.partialorder %v419_v61, 0.0 }
  0xfe   : > { %v423_v5 = vadd.f32 %v422_v3, %v282_v2  ;;  %v424_v6 = vpop.f32.mrb[11].mxu0  ;;  %578 = vmatprep.subr.bf16.mxu0 %v506_v0  ;;  %980 = vmatprep.subr.bf16.mxu1 %v506_v0  ;;  %v479_v13 = vsel %vm447_vm10, %v417_v58, %v463_v4 }
  0xff   : > { %v425_v8 = vadd.f32 %v424_v6, %v282_v2  ;;  %579 = vmatpush1.bf16.msra.mxu0 %v505_v60  ;;  %984 = vmatpush1.bf16.msra.mxu1 %v505_v60  ;;  %v480_v19 = vsel %vm448_vm11, %v419_v61, %v464_v7 }
 0x100   : > { %vm449_vm12 = vcmp.ge.f32.partialorder %v423_v5, 0.0  ;;  %v465_v9 = vmul.f32 0.2, %v423_v5 }
 0x101   : > { %vm450_vm13 = vcmp.ge.f32.partialorder %v425_v8, 0.0  ;;  %v466_v11 = vmul.f32 0.2, %v425_v8  ;;  %v428_v12 = vpop.f32.mrb[12].mxu0 }
 0x102   : > { %v481_v14 = vsel %vm449_vm12, %v423_v5, %v465_v9  ;;  %v429_v15 = vadd.f32 %v428_v12, %v287_v10  ;;  %v430_v16 = vpop.f32.mrb[13].mxu0 }
 0x103   : > { %v507_v17 = vpack.c.bf16 %v481_v14, %v479_v13  ;;  %v431_v18 = vadd.f32 %v430_v16, %v287_v10  ;;  %v482_v20 = vsel %vm450_vm13, %v425_v8, %v466_v11 }
 0x104   : > { %v508_v21 = vpack.c.bf16 %v482_v20, %v480_v19  ;;  %v467_v24 = vmul.f32 0.2, %v429_v15  ;;  %vm451_vm14 = vcmp.ge.f32.partialorder %v429_v15, 0.0 }
 0x105   : > { %v434_v23 = vpop.f32.mrb[14].mxu0  ;;  %v468_v27 = vmul.f32 0.2, %v431_v18  ;;  %vm452_vm15 = vcmp.ge.f32.partialorder %v431_v18, 0.0 }
 0x106   : > { %v435_v25 = vadd.f32 %v434_v23, %v292_v22  ;;  %v436_v26 = vpop.f32.mrb[15].mxu0  ;;  %580 = vmatprep.subr.bf16.mxu0 %v508_v21  ;;  %981 = vmatprep.subr.bf16.mxu1 %v508_v21  ;;  %v483_v31 = vsel %vm451_vm14, %v429_v15, %v467_v24 }
 0x107   : > { %v437_v28 = vadd.f32 %v436_v26, %v292_v22  ;;  %581 = vmatpush1.bf16.msra.mxu0 %v507_v17  ;;  %985 = vmatpush1.bf16.msra.mxu1 %v507_v17  ;;  %v484_v34 = vsel %vm452_vm15, %v431_v18, %v468_v27 }
 0x108   : > { %vm453_vm0 = vcmp.ge.f32.partialorder %v435_v25, 0.0  ;;  %v469_v29 = vmul.f32 0.2, %v435_v25 }
 0x109   : > { %vm454_vm1 = vcmp.ge.f32.partialorder %v437_v28, 0.0  ;;  %v470_v30 = vmul.f32 0.2, %v437_v28 }
 0x10a   : > { %v485_v32 = vsel %vm453_vm0, %v435_v25, %v469_v29 }
 0x10b   : > { %v509_v33 = vpack.c.bf16 %v485_v32, %v483_v31  ;;  %v486_v35 = vsel %vm454_vm1, %v437_v28, %v470_v30 }
 0x10c   : > { %v510_v36 = vpack.c.bf16 %v486_v35, %v484_v34 }
 0x10e   : > { %582 = vmatprep.subr.bf16.mxu0 %v510_v36  ;;  %982 = vmatprep.subr.bf16.mxu1 %v510_v36 }
 0x10f   : > { %583 = vmatpush1.bf16.msra.mxu0 %v509_v33  ;;  %986 = vmatpush1.bf16.msra.mxu1 %v509_v33 }
 0x112   : > { %967 = vmatmul.mubr.msk.bf16.vlgmr.msra.gmra.mrb[16].mxu0 %vm551_vm2, %v1016_v37  ;;  %969 = vmatmul.mubr.msk.bf16.vlgmr.msra.gmra.mrb[0].mxu1 %vm551_vm2, %v1017_v38 }
 0x113   : > { %618 = vmatprep.mubr.bf16.mxu0 %v1049_v1  ;;  %638 = vmatprep.mubr.bf16.mxu1 %v1049_v1 }
 0x11a   : > { %968 = vmatmul.mubr.msk.bf16.gmra.mrb[20].mxu0 %vm551_vm2, %v1018_v39  ;;  %970 = vmatmul.mubr.msk.bf16.gmra.mrb[4].mxu1 %vm551_vm2, %v1019_v40 }
 0x11b   : > { %648 = vmatprep.mubr.bf16.mxu1 %v1049_v1 }
 0x122   : > { %971 = vmatmul.mubr.msk.bf16.gmra.mrb[8].mxu1 %vm551_vm2, %v1020_v41 }
 0x123   : > { %658 = vmatprep.mubr.bf16.mxu1 %v1049_v1 }
 0x12a   : > { %972 = vmatmul.mubr.msk.bf16.gmra.mrb[12].mxu1 %vm551_vm2, %v1021_v42 }
 0x12b   : > { %668 = vmatprep.mubr.bf16.mxu1 %v1049_v1 }
 0x132   : > { %973 = vmatmul.mubr.msk.bf16.gmra.mrb[16].mxu1 %vm551_vm2, %v1022_v43 }
 0x133   : > { %678 = vmatprep.mubr.bf16.mxu1 %v1049_v1 }
 0x13a   : > { %974 = vmatmul.mubr.msk.bf16.gmra.mrb[20].mxu1 %vm551_vm2, %v1023_v44 }
 0x1e5   : > { %v610_v45 = vpop.f32.mrb[16].mxu0  ;;  %v630_v46 = vpop.f32.mrb[0].mxu1 }
 0x1e6   : > { %v737_v47 = vmul.f32 %v610_v45, %v610_v45  ;;  %v745_v48 = vmul.f32 %v630_v46, %v630_v46  ;;  %v612_v49 = vpop.f32.mrb[17].mxu0  ;;  %v632_v50 = vpop.f32.mrb[1].mxu1 }
 0x1e7   : > { %v738_v51 = vmul.f32 %v612_v49, %v612_v49  ;;  %v746_v52 = vmul.f32 %v632_v50, %v632_v50  ;;  %v701_v53 = vadd.f32 %v632_v50, %v630_v46  ;;  %v634_v54 = vpop.f32.mrb[2].mxu1  ;;  %v689_v55 = vadd.f32 %v612_v49, %v610_v45  ;;  %v614_v56 = vpop.f32.mrb[18].mxu0 }
 0x1e8   : > { %v747_v57 = vmul.f32 %v634_v54, %v634_v54  ;;  %v739_v1 = vmul.f32 %v614_v56, %v614_v56  ;;  %v616_v58 = vpop.f32.mrb[19].mxu0  ;;  %v636_v59 = vpop.f32.mrb[3].mxu1 }
 0x1e9   : > { %702 = vadd.xlane.f32.xlu1 %v701_v53  ;;  %690 = vadd.xlane.f32.xlu0 %v689_v55  ;;  %v740_v60 = vmul.f32 %v616_v58, %v616_v58  ;;  %v748_v61 = vmul.f32 %v636_v59, %v636_v59  ;;  %v704_v62 = vadd.f32 %v636_v59, %v634_v54 }
 0x1ea   : > { %v692_v63 = vadd.f32 %v616_v58, %v614_v56  ;;  %v769_v0 = vadd.f32 %v738_v51, %v737_v47  ;;  %v781_v2 = vadd.f32 %v746_v52, %v745_v48 }
 0x1eb   : > { %v772_v3 = vadd.f32 %v740_v60, %v739_v1  ;;  %v784_v4 = vadd.f32 %v748_v61, %v747_v57 }
 0x1ed   : > { %705 = vadd.xlane.f32.xlu0 %v704_v62  ;;  %693 = vadd.xlane.f32.xlu1 %v692_v63  ;;  %v640_v5 = vpop.f32.mrb[4].mxu1  ;;  %v620_v6 = vpop.f32.mrb[20].mxu0 }
 0x1ee   : > { %v749_v7 = vmul.f32 %v640_v5, %v640_v5  ;;  %v741_v8 = vmul.f32 %v620_v6, %v620_v6  ;;  %v622_v9 = vpop.f32.mrb[21].mxu0  ;;  %v642_v10 = vpop.f32.mrb[5].mxu1 }
 0x1ef   : > { %v742_v11 = vmul.f32 %v622_v9, %v622_v9  ;;  %v750_v12 = vmul.f32 %v642_v10, %v642_v10  ;;  %v707_v13 = vadd.f32 %v642_v10, %v640_v5  ;;  %v695_v14 = vadd.f32 %v622_v9, %v620_v6  ;;  %v624_v15 = vpop.f32.mrb[22].mxu0  ;;  %v644_v16 = vpop.f32.mrb[6].mxu1 }
 0x1f0   : > { %v743_v17 = vmul.f32 %v624_v15, %v624_v15  ;;  %v626_v18 = vpop.f32.mrb[23].mxu0  ;;  %v751_v19 = vmul.f32 %v644_v16, %v644_v16  ;;  %v646_v20 = vpop.f32.mrb[7].mxu1 }
 0x1f1   : > { %773 = vadd.xlane.f32.xlu0 %v772_v3  ;;  %770 = vadd.xlane.f32.xlu1 %v769_v0  ;;  %v698_v21 = vadd.f32 %v626_v18, %v624_v15  ;;  %v744_v22 = vmul.f32 %v626_v18, %v626_v18  ;;  %v775_v23 = vadd.f32 %v742_v11, %v741_v8 }
 0x1f2   : > { %v752_v24 = vmul.f32 %v646_v20, %v646_v20  ;;  %v710_v25 = vadd.f32 %v646_v20, %v644_v16  ;;  %v787_v26 = vadd.f32 %v750_v12, %v749_v7 }
 0x1f3   : > { %v778_v27 = vadd.f32 %v744_v22, %v743_v17 }
 0x1f4   : > { %v790_v28 = vadd.f32 %v752_v24, %v751_v19 }
 0x1f5   : > { %785 = vadd.xlane.f32.xlu0 %v784_v4  ;;  %782 = vadd.xlane.f32.xlu1 %v781_v2  ;;  %v650_v29 = vpop.f32.mrb[8].mxu1 }
 0x1f6   : > { %v753_v30 = vmul.f32 %v650_v29, %v650_v29  ;;  %v652_v31 = vpop.f32.mrb[9].mxu1 }
 0x1f7   : > { %v754_v32 = vmul.f32 %v652_v31, %v652_v31  ;;  %v654_v33 = vpop.f32.mrb[10].mxu1  ;;  %v713_v34 = vadd.f32 %v652_v31, %v650_v29 }
 0x1f8   : > { %v755_v35 = vmul.f32 %v654_v33, %v654_v33  ;;  %v656_v36 = vpop.f32.mrb[11].mxu1 }
 0x1f9   : > { %708 = vadd.xlane.f32.xlu1 %v707_v13  ;;  %696 = vadd.xlane.f32.xlu0 %v695_v14  ;;  %v756_v37 = vmul.f32 %v656_v36, %v656_v36  ;;  %v716_v38 = vadd.f32 %v656_v36, %v654_v33  ;;  %v793_v39 = vadd.f32 %v754_v32, %v753_v30 }
 0x1fb   : > { %v796_v40 = vadd.f32 %v756_v37, %v755_v35 }
 0x1fd   : > { %776 = vadd.xlane.f32.xlu1 %v775_v23  ;;  %699 = vadd.xlane.f32.xlu0 %v698_v21  ;;  %v660_v41 = vpop.f32.mrb[12].mxu1 }
 0x1fe   : > { %v757_v42 = vmul.f32 %v660_v41, %v660_v41  ;;  %v662_v43 = vpop.f32.mrb[13].mxu1 }
 0x1ff   : > { %v758_v44 = vmul.f32 %v662_v43, %v662_v43  ;;  %v664_v45 = vpop.f32.mrb[14].mxu1  ;;  %v719_v46 = vadd.f32 %v662_v43, %v660_v41 }
 0x200   : > { %v759_v47 = vmul.f32 %v664_v45, %v664_v45  ;;  %v666_v48 = vpop.f32.mrb[15].mxu1 }
 0x201   : > { %711 = vadd.xlane.f32.xlu0 %v710_v25  ;;  %788 = vadd.xlane.f32.xlu1 %v787_v26  ;;  %v760_v49 = vmul.f32 %v666_v48, %v666_v48  ;;  %v722_v50 = vadd.f32 %v666_v48, %v664_v45  ;;  %v799_v51 = vadd.f32 %v758_v44, %v757_v42 }
 0x203   : > { %v802_v52 = vadd.f32 %v760_v49, %v759_v47 }
 0x205   : > { %779 = vadd.xlane.f32.xlu0 %v778_v27  ;;  %714 = vadd.xlane.f32.xlu1 %v713_v34  ;;  %v670_v53 = vpop.f32.mrb[16].mxu1 }
 0x206   : > { %v761_v54 = vmul.f32 %v670_v53, %v670_v53  ;;  %v672_v55 = vpop.f32.mrb[17].mxu1 }
 0x207   : > { %v762_v56 = vmul.f32 %v672_v55, %v672_v55  ;;  %v674_v57 = vpop.f32.mrb[18].mxu1  ;;  %v725_v1 = vadd.f32 %v672_v55, %v670_v53 }
 0x208   : > { %v763_v58 = vmul.f32 %v674_v57, %v674_v57  ;;  %v676_v59 = vpop.f32.mrb[19].mxu1 }
 0x209   : > { %791 = vadd.xlane.f32.xlu0 %v790_v28  ;;  %794 = vadd.xlane.f32.xlu1 %v793_v39  ;;  %v764_v60 = vmul.f32 %v676_v59, %v676_v59  ;;  %v728_v61 = vadd.f32 %v676_v59, %v674_v57  ;;  %v805_v62 = vadd.f32 %v762_v56, %v761_v54 }
 0x20b   : > { %v808_v63 = vadd.f32 %v764_v60, %v763_v58 }
 0x20d   : > { %717 = vadd.xlane.f32.xlu0 %v716_v38  ;;  %720 = vadd.xlane.f32.xlu1 %v719_v46  ;;  %v680_v0 = vpop.f32.mrb[20].mxu1 }
 0x20e   : > { %v765_v2 = vmul.f32 %v680_v0, %v680_v0  ;;  %v682_v3 = vpop.f32.mrb[21].mxu1 }
 0x20f   : > { %v766_v4 = vmul.f32 %v682_v3, %v682_v3  ;;  %v684_v5 = vpop.f32.mrb[22].mxu1  ;;  %v731_v6 = vadd.f32 %v682_v3, %v680_v0 }
 0x210   : > { %v767_v7 = vmul.f32 %v684_v5, %v684_v5  ;;  %v686_v8 = vpop.f32.mrb[23].mxu1 }
 0x211   : > { %797 = vadd.xlane.f32.xlu0 %v796_v40  ;;  %800 = vadd.xlane.f32.xlu1 %v799_v51  ;;  %v734_v9 = vadd.f32 %v686_v8, %v684_v5  ;;  %v768_v10 = vmul.f32 %v686_v8, %v686_v8  ;;  %v811_v11 = vadd.f32 %v766_v4, %v765_v2 }
 0x213   : > { %v814_v12 = vadd.f32 %v768_v10, %v767_v7 }
 0x215   : > { %723 = vadd.xlane.f32.xlu0 %v722_v50  ;;  %726 = vadd.xlane.f32.xlu1 %v725_v1 }
 0x219   : > { %803 = vadd.xlane.f32.xlu0 %v802_v52  ;;  %806 = vadd.xlane.f32.xlu1 %v805_v62 }
 0x21d   : > { %729 = vadd.xlane.f32.xlu0 %v728_v61  ;;  %732 = vadd.xlane.f32.xlu1 %v731_v6 }
 0x221   : > { %809 = vadd.xlane.f32.xlu0 %v808_v63  ;;  %812 = vadd.xlane.f32.xlu1 %v811_v11 }
 0x225   : > { %735 = vadd.xlane.f32.xlu0 %v734_v9 }
 0x229   : > { %815 = vadd.xlane.f32.xlu0 %v814_v12 }
 0x276   : > { %v703_v13 = vpop.xlane.xlu1 %702  ;;  %v691_v14 = vpop.xlane.xlu0 %690 }
 0x27a   : > { %v706_v15 = vpop.xlane.xlu0 %705  ;;  %v694_v16 = vpop.xlane.xlu1 %693 }
 0x27e   : > { %v774_v17 = vpop.xlane.xlu0 %773  ;;  %v771_v18 = vpop.xlane.xlu1 %770 }
 0x27f   : > { %v819_v19 = vsel %vm817_vm3, %v694_v16, %v774_v17  ;;  %v818_v20 = vsel %vm817_vm3, %v691_v14, %v771_v18 }
 0x280   : > { %836 = vst.msk [vmem:[%s1201_s30 + $0x8] sm:$0xff] %vm834_vm4, %v819_v19  ;;  %835 = vst.msk [vmem:[%s1201_s30] sm:$0xff] %vm834_vm4, %v818_v20 }
 0x282   : > { %v786_v21 = vpop.xlane.xlu0 %785  ;;  %v783_v22 = vpop.xlane.xlu1 %782 }
 0x283   : > { %v823_v23 = vsel %vm817_vm3, %v706_v15, %v786_v21  ;;  %v822_v24 = vsel %vm817_vm3, %v703_v13, %v783_v22 }
 0x284   : > { %840 = vst.msk [vmem:[%s1201_s30 + $0x28] sm:$0xff] %vm834_vm4, %v823_v23  ;;  %839 = vst.msk [vmem:[%s1201_s30 + $0x20] sm:$0xff] %vm834_vm4, %v822_v24 }
 0x286   : > { %v709_v25 = vpop.xlane.xlu1 %708  ;;  %v697_v26 = vpop.xlane.xlu0 %696 }
 0x28a   : > { %v777_v27 = vpop.xlane.xlu1 %776  ;;  %v700_v28 = vpop.xlane.xlu0 %699 }
 0x28b   : > { %v820_v29 = vsel %vm817_vm3, %v697_v26, %v777_v27 }
 0x28c   : > { %837 = vst.msk [vmem:[%s1201_s30 + $0x10] sm:$0xff] %vm834_vm4, %v820_v29 }
 0x28e   : > { %v712_v30 = vpop.xlane.xlu0 %711  ;;  %v789_v31 = vpop.xlane.xlu1 %788 }
 0x28f   : > { %v824_v32 = vsel %vm817_vm3, %v709_v25, %v789_v31 }
 0x290   : > { %841 = vst.msk [vmem:[%s1201_s30 + $0x30] sm:$0xff] %vm834_vm4, %v824_v32 }
 0x292   : > { %v780_v33 = vpop.xlane.xlu0 %779  ;;  %v715_v34 = vpop.xlane.xlu1 %714 }
 0x293   : > { %v821_v35 = vsel %vm817_vm3, %v700_v28, %v780_v33 }
 0x294   : > { %838 = vst.msk [vmem:[%s1201_s30 + $0x18] sm:$0xff] %vm834_vm4, %v821_v35 }
 0x296   : > { %v792_v36 = vpop.xlane.xlu0 %791  ;;  %v795_v37 = vpop.xlane.xlu1 %794 }
 0x297   : > { %v825_v38 = vsel %vm817_vm3, %v712_v30, %v792_v36  ;;  %v826_v39 = vsel %vm817_vm3, %v715_v34, %v795_v37 }
 0x298   : > { %842 = vst.msk [vmem:[%s1201_s30 + $0x38] sm:$0xff] %vm834_vm4, %v825_v38  ;;  %843 = vst.msk [vmem:[%s1201_s30 + $0x40] sm:$0xff] %vm834_vm4, %v826_v39 }
 0x29a   : > { %v718_v40 = vpop.xlane.xlu0 %717  ;;  %v721_v41 = vpop.xlane.xlu1 %720 }
 0x29e   : > { %v798_v42 = vpop.xlane.xlu0 %797  ;;  %v801_v43 = vpop.xlane.xlu1 %800 }
 0x29f   : > { %v827_v44 = vsel %vm817_vm3, %v718_v40, %v798_v42  ;;  %v828_v45 = vsel %vm817_vm3, %v721_v41, %v801_v43 }
 0x2a0   : > { %844 = vst.msk [vmem:[%s1201_s30 + $0x48] sm:$0xff] %vm834_vm4, %v827_v44  ;;  %845 = vst.msk [vmem:[%s1201_s30 + $0x50] sm:$0xff] %vm834_vm4, %v828_v45 }
 0x2a2   : > { %v724_v46 = vpop.xlane.xlu0 %723  ;;  %v727_v47 = vpop.xlane.xlu1 %726 }
 0x2a6   : > { %v804_v48 = vpop.xlane.xlu0 %803  ;;  %v807_v49 = vpop.xlane.xlu1 %806 }
 0x2a7   : > { %v829_v50 = vsel %vm817_vm3, %v724_v46, %v804_v48  ;;  %v830_v51 = vsel %vm817_vm3, %v727_v47, %v807_v49 }
 0x2a8   : > { %846 = vst.msk [vmem:[%s1201_s30 + $0x58] sm:$0xff] %vm834_vm4, %v829_v50  ;;  %847 = vst.msk [vmem:[%s1201_s30 + $0x60] sm:$0xff] %vm834_vm4, %v830_v51 }
 0x2aa   : > { %v730_v52 = vpop.xlane.xlu0 %729  ;;  %v733_v53 = vpop.xlane.xlu1 %732 }
 0x2ae   : > { %v810_v54 = vpop.xlane.xlu0 %809  ;;  %v813_v55 = vpop.xlane.xlu1 %812 }
 0x2af   : > { %v831_v56 = vsel %vm817_vm3, %v730_v52, %v810_v54  ;;  %v832_v57 = vsel %vm817_vm3, %v733_v53, %v813_v55 }
 0x2b0   : > { %848 = vst.msk [vmem:[%s1201_s30 + $0x68] sm:$0xff] %vm834_vm4, %v831_v56  ;;  %849 = vst.msk [vmem:[%s1201_s30 + $0x70] sm:$0xff] %vm834_vm4, %v832_v57 }
 0x2b2   : > { %v736_v1 = vpop.xlane.xlu0 %735 }
 0x2b6   : > { %v816_v58 = vpop.xlane.xlu0 %815 }
 0x2b7   : > { %v833_v59 = vsel %vm817_vm3, %v736_v1, %v816_v58 }
 0x2b8   : > { %850 = vst.msk [vmem:[%s1201_s30 + $0x78] sm:$0xff] %vm834_vm4, %v833_v59 }
 0x2b9 PF: > { %s14_s17 = sadd.s32 1, %s1046_s17   ;;  %s1265_s15 = smov %s1042_s16 }
 0x2ba   : > { %p11_p5 = scmp.ge.s32.totalorder %s14_s17, 4   ;;  %s1266_s16 = smov %s1268_s18 }
 0x2bc   :  { %13 = sbr.rel (!%p11_p5) target bundleno = 2 (0x2), region = 66 }

// kernel: pixel_discriminator_forward.3
= control target key start
LH: loop header
LB: loop body
LE: loop exit
PB: predicated region body
PF: predicated region fallthrough
CT: control target
= control target key end

     0   :  { %s1447_s24 = smov 0   ;;  %s1449_s25 = smov 0   ;;  %s1730_s0 = inlined_call_operand.vmem [shape: f32[2,4,256], index: 0, kind: input, shape index: {}]   ;;  %s1731_s1 = inlined_call_operand.vmem [shape: f32[64,4], index: 1, kind: input, shape index: {}]   ;;  %s1732_s2 = inlined_call_operand.vmem [shape: f32[64,1], index: 2, kind: input, shape index: {}]   ;;  %s1733_s3 = inlined_call_operand.vmem [shape: bf16[128,64], index: 3, kind: input, shape index: {}]   ;;  %s1734_s4 = inlined_call_operand.vmem [shape: f32[128,1], index: 4, kind: input, shape index: {}]   ;;  %s1735_s5 = inlined_call_operand.vmem [shape: f32[128,1], index: 5, kind: input, shape index: {}]   ;;  %s1736_s6 = inlined_call_operand.vmem [shape: bf16[1,128], index: 6, kind: input, shape index: {}]   ;;  %s1737_s7 = inlined_call_operand.vmem [shape: f32[2,1,256], index: 7, kind: output, shape index: {}]  }
   0x1   :  { %s1451_s26 = smov 0  }
   0x2 LB: > { %s29_s27 = sadd.s32 1, %s1398_s25  ;;  %p1299_p0 = scmp.ge.s32.totalorder %s1402_s26, 1  ;;  %s1402_s26 = sphi %s1451_s26, %s17_s26   ;;  %s1398_s25 = sphi %s1449_s25, %s1739_s25   ;;  %s1394_s24 = sphi %s1447_s24, %s1738_s24  }
   0x3   : > { %p31_p1 = scmp.ge.s32.totalorder %s29_s27, 2  ;;  %p258_p2 = scmp.lt.s32.totalorder %s1402_s26, 3 }
   0x5   : > { %s1741_s27 = smov (%p31_p1, %s29_s27), 0  ;;  %p259_p3 = pnand %p1299_p0, %p258_p2 }
   0x6   : > { %p298_p4 = scmp.lt.s32.totalorder (!%p259_p3), %s1394_s24, 1  ;;  %v1404_v0 = vmov (!%p259_p3), 0.0   ;;  %v1405_v1 = vmov (!%p259_p3), 0   ;;  %v326_v2 = vld [vmem:[%s1732_s2] sm:$0xff] (!%p259_p3)  ;;  %v328_v3 = vld [vmem:[%s1732_s2 + $0x10] sm:$0xff] (!%p259_p3)  ;;  %v327_v4 = vld [vmem:[%s1732_s2 + $0x8] sm:$0xff] (!%p259_p3) }
   0x7   : > { %262 = sbr.rel (%p259_p3) target bundleno = 804 (0x324), region = 48  ;;  %470 = vmatprep.mubr.f32.mxu0 (!%p259_p3), %v1404_v0  ;;  %1361 = vset.pattern.permute.xlu0 (!%p259_p3), %v1405_v1  ;;  %v329_v5 = vld [vmem:[%s1732_s2 + $0x18] sm:$0xff] (!%p259_p3)  ;;  %vm401_vm0 = vcmask (!%p259_p3), 1043456   ;;  %v318_v8 = vld [vmem:[%s1731_s1] sm:$0xff] (!%p259_p3)  ;;  %vm376_vm1 = vcmask (!%p259_p3), 31744   ;;  %v331_v10 = vld [vmem:[%s1732_s2 + $0x28] sm:$0xff] (!%p259_p3) }
   0x8   : > { %1362 = vset.pattern.permute.xlu1 (!%p259_p3), %v1405_v1  ;;  %336 = vperm.xlu0 (!%p259_p3), %1361, %v326_v2   ;;  %v330_v9 = vld [vmem:[%s1732_s2 + $0x20] sm:$0xff] (!%p259_p3)  ;;  %v319_v11 = vld [vmem:[%s1731_s1 + $0x8] sm:$0xff] (!%p259_p3)  ;;  %v332_v12 = vld [vmem:[%s1732_s2 + $0x30] sm:$0xff] (!%p259_p3) }
   0x9   : > { %688 = vmatprep.mubr.bf16.mxu1 (!%p259_p3), %v1405_v1  ;;  %346 = vperm.xlu1 (!%p259_p3), %1362, %v328_v3   ;;  %v333_v13 = vld [vmem:[%s1732_s2 + $0x38] sm:$0xff] (!%p259_p3)  ;;  %v320_v14 = vld [vmem:[%s1731_s1 + $0x10] sm:$0xff] (!%p259_p3)  ;;  %v769_v15 = vld [vmem:[%s1734_s4] sm:$0xff] (!%p259_p3) }
   0xa   : > { %v770_v16 = vld [vmem:[%s1734_s4 + $0x8] sm:$0xff] (!%p259_p3)  ;;  %v321_v17 = vld [vmem:[%s1731_s1 + $0x18] sm:$0xff] (!%p259_p3)  ;;  %v897_v18 = vld [vmem:[%s1735_s5] sm:$0xff] (!%p259_p3) }
   0xb   : > { %v898_v19 = vld [vmem:[%s1735_s5 + $0x8] sm:$0xff] (!%p259_p3)  ;;  %v322_v20 = vld [vmem:[%s1731_s1 + $0x20] sm:$0xff] (!%p259_p3)  ;;  %v771_v21 = vld [vmem:[%s1734_s4 + $0x10] sm:$0xff] (!%p259_p3) }
   0xc   : > { %341 = vperm.xlu0 (!%p259_p3), %1361, %v327_v4   ;;  %v772_v22 = vld [vmem:[%s1734_s4 + $0x18] sm:$0xff] (!%p259_p3)  ;;  %v323_v23 = vld [vmem:[%s1731_s1 + $0x28] sm:$0xff] (!%p259_p3)  ;;  %v899_v24 = vld [vmem:[%s1735_s5 + $0x10] sm:$0xff] (!%p259_p3) }
   0xd   : > { %351 = vperm.xlu1 (!%p259_p3), %1362, %v329_v5   ;;  %v900_v25 = vld [vmem:[%s1735_s5 + $0x18] sm:$0xff] (!%p259_p3)  ;;  %v324_v26 = vld [vmem:[%s1731_s1 + $0x30] sm:$0xff] (!%p259_p3)  ;;  %v773_v27 = vld [vmem:[%s1734_s4 + $0x20] sm:$0xff] (!%p259_p3) }
   0xe   : > { %s1743_s24 = smov (!%p298_p4, %s1394_s24), 1  ;;  %v774_v28 = vld [vmem:[%s1734_s4 + $0x28] sm:$0xff]  ;;  %v325_v29 = vld [vmem:[%s1731_s1 + $0x38] sm:$0xff]  ;;  %v901_v30 = vld [vmem:[%s1735_s5 + $0x20] sm:$0xff] }
   0xf   : > { %s1333_s9 = sshll.u32 %s1743_s24, 3  ;;  %v902_v31 = vld [vmem:[%s1735_s5 + $0x28] sm:$0xff]  ;;  %v775_v32 = vld [vmem:[%s1734_s4 + $0x30] sm:$0xff]  ;;  %v776_v33 = vld [vmem:[%s1734_s4 + $0x38] sm:$0xff] }
  0x10   : > { %s305_s14 = scalar_lea.vmem %s1730_s0, %s1333_s9  ;;  %356 = vperm.xlu0 %1361, %v330_v9   ;;  %v903_v34 = vld [vmem:[%s1735_s5 + $0x30] sm:$0xff]  ;;  %v904_v35 = vld [vmem:[%s1735_s5 + $0x38] sm:$0xff]  ;;  %v777_v36 = vld [vmem:[%s1734_s4 + $0x40] sm:$0xff]  ;;  %s1302_s9 = sshll.u32 %s1743_s24, 1 }
  0x11   : > { %v317_v6 = vld [vmem:[%s305_s14] sm:$0xff]  ;;  %361 = vperm.xlu1 %1362, %v331_v10   ;;  %v778_v37 = vld [vmem:[%s1734_s4 + $0x48] sm:$0xff]  ;;  %v779_v40 = vld [vmem:[%s1734_s4 + $0x50] sm:$0xff]  ;;  %s314_s12 = scalar_lea.vmem %s1737_s7, %s1302_s9 }
  0x12   : > { %v375_v7 = vcombine.high %v317_v6, %v317_v6  ;;  %v905_v38 = vld [vmem:[%s1735_s5 + $0x40] sm:$0xff]  ;;  %v906_v39 = vld [vmem:[%s1735_s5 + $0x48] sm:$0xff]  ;;  %v780_v41 = vld [vmem:[%s1734_s4 + $0x58] sm:$0xff] }
  0x13   : > { %v907_v42 = vld [vmem:[%s1735_s5 + $0x50] sm:$0xff]  ;;  %v908_v43 = vld [vmem:[%s1735_s5 + $0x58] sm:$0xff]  ;;  %v781_v44 = vld [vmem:[%s1734_s4 + $0x60] sm:$0xff] }
  0x14   : > { %1303 = vmatprep.subr.msk.mxu0 %vm401_vm0, %v375_v7  ;;  %366 = vperm.xlu0 %1361, %v332_v12   ;;  %v782_v45 = vld [vmem:[%s1734_s4 + $0x68] sm:$0xff]  ;;  %v909_v46 = vld [vmem:[%s1735_s5 + $0x60] sm:$0xff]  ;;  %v783_v48 = vld [vmem:[%s1734_s4 + $0x70] sm:$0xff] }
  0x15   : > { %1304 = vmatpush1.msk.msra.mxu0 %vm401_vm0, %v317_v6  ;;  %371 = vperm.xlu1 %1362, %v333_v13   ;;  %v910_v47 = vld [vmem:[%s1735_s5 + $0x68] sm:$0xff]  ;;  %v784_v49 = vld [vmem:[%s1734_s4 + $0x78] sm:$0xff]  ;;  %v911_v50 = vld [vmem:[%s1735_s5 + $0x70] sm:$0xff] }
  0x16   : > { %1305 = vmatmul.mubr.msk.f32.vlgmr.msra.gmra.mrb[0].mxu0 %vm376_vm1, %v318_v8  ;;  %v912_v51 = vld [vmem:[%s1735_s5 + $0x78] sm:$0xff] }
  0x17   : > { %476 = vmatprep.mubr.f32.mxu0 %v1404_v0 }
  0x18   : > { %787 = vperm.xlu0 %1361, %v769_v15  }
  0x19   : > { %792 = vperm.xlu1 %1362, %v770_v16  }
  0x1a   : > { %1306 = vmatmul.mubr.msk.f32.gmra.mrb[2].mxu0 %vm376_vm1, %v319_v11 }
  0x1b   : > { %482 = vmatprep.mubr.f32.mxu0 %v1404_v0 }
  0x1c   : > { %915 = vperm.xlu0 %1361, %v897_v18  }
  0x1d   : > { %920 = vperm.xlu1 %1362, %v898_v19  }
  0x1e   : > { %1307 = vmatmul.mubr.msk.f32.gmra.mrb[4].mxu0 %vm376_vm1, %v320_v14 }
  0x1f   : > { %488 = vmatprep.mubr.f32.mxu0 %v1404_v0 }
  0x20   : > { %797 = vperm.xlu0 %1361, %v771_v21  }
  0x21   : > { %802 = vperm.xlu1 %1362, %v772_v22  }
  0x22   : > { %1308 = vmatmul.mubr.msk.f32.gmra.mrb[6].mxu0 %vm376_vm1, %v321_v17 }
  0x23   : > { %494 = vmatprep.mubr.f32.mxu0 %v1404_v0 }
  0x24   : > { %925 = vperm.xlu0 %1361, %v899_v24  }
  0x25   : > { %930 = vperm.xlu1 %1362, %v900_v25  }
  0x26   : > { %1309 = vmatmul.mubr.msk.f32.gmra.mrb[8].mxu0 %vm376_vm1, %v322_v20 }
  0x27   : > { %500 = vmatprep.mubr.f32.mxu0 %v1404_v0 }
  0x28   : > { %807 = vperm.xlu0 %1361, %v773_v27  }
  0x29   : > { %812 = vperm.xlu1 %1362, %v774_v28  }
  0x2a   : > { %1310 = vmatmul.mubr.msk.f32.gmra.mrb[10].mxu0 %vm376_vm1, %v323_v23 }
  0x2b   : > { %506 = vmatprep.mubr.f32.mxu0 %v1404_v0 }
  0x2c   : > { %935 = vperm.xlu0 %1361, %v901_v30  }
  0x2d   : > { %940 = vperm.xlu1 %1362, %v902_v31  }
  0x2e   : > { %1311 = vmatmul.mubr.msk.f32.gmra.mrb[12].mxu0 %vm376_vm1, %v324_v26 }
  0x2f   : > { %512 = vmatprep.mubr.f32.mxu0 %v1404_v0 }
  0x30   : > { %817 = vperm.xlu0 %1361, %v775_v32  }
  0x31   : > { %822 = vperm.xlu1 %1362, %v776_v33  }
  0x32   : > { %1312 = vmatmul.mubr.msk.f32.gmra.mrb[14].mxu0 %vm376_vm1, %v325_v29 }
  0x33   : > { %1170 = vmatprep.mubr.bf16.mxu0 %v1405_v1 }
  0x34   : > { %945 = vperm.xlu0 %1361, %v903_v34  }
  0x35   : > { %950 = vperm.xlu1 %1362, %v904_v35  }
  0x38   : > { %827 = vperm.xlu0 %1361, %v777_v36  }
  0x39   : > { %832 = vperm.xlu1 %1362, %v778_v37  }
  0x3c   : > { %955 = vperm.xlu0 %1361, %v905_v38  }
  0x3d   : > { %960 = vperm.xlu1 %1362, %v906_v39  }
  0x40   : > { %837 = vperm.xlu0 %1361, %v779_v40  }
  0x41   : > { %842 = vperm.xlu1 %1362, %v780_v41  }
  0x44   : > { %965 = vperm.xlu0 %1361, %v907_v42  }
  0x45   : > { %970 = vperm.xlu1 %1362, %v908_v43  }
  0x48   : > { %847 = vperm.xlu0 %1361, %v781_v44  }
  0x49   : > { %852 = vperm.xlu1 %1362, %v782_v45  }
  0x4c   : > { %975 = vperm.xlu0 %1361, %v909_v46  }
  0x4d   : > { %980 = vperm.xlu1 %1362, %v910_v47  }
  0x50   : > { %857 = vperm.xlu0 %1361, %v783_v48  }
  0x51   : > { %862 = vperm.xlu1 %1362, %v784_v49  }
  0x54   : > { %985 = vperm.xlu0 %1361, %v911_v50  }
  0x55   : > { %990 = vperm.xlu1 %1362, %v912_v51  }
  0x87   : > { %v337_v52 = vpop.permute.xlu0 %336 }
  0x88   : > { %v347_v62 = vpop.permute.xlu1 %346 }
  0x8b   : > { %v342_v57 = vpop.permute.xlu0 %341 }
  0x8c   : > { %v352_v14 = vpop.permute.xlu1 %351 }
  0x8f   : > { %v357_v22 = vpop.permute.xlu0 %356 }
  0x90   : > { %v362_v34 = vpop.permute.xlu1 %361 }
  0x93   : > { %v367_v42 = vpop.permute.xlu0 %366 }
  0xe9   : > { %v472_v53 = vpop.f32.mrb[0].mxu0 }
  0xea   : > { %v473_v54 = vadd.f32 %v472_v53, %v337_v52  ;;  %v474_v55 = vpop.f32.mrb[1].mxu0 }
  0xeb   : > { %v475_v56 = vadd.f32 %v474_v55, %v337_v52 }
  0xec   : > { %v535_v59 = vmul.f32 0.2, %v473_v54  ;;  %vm519_vm2 = vcmp.ge.f32.partialorder %v473_v54, 0.0 }
  0xed   : > { %v478_v58 = vpop.f32.mrb[2].mxu0  ;;  %v536_v63 = vmul.f32 0.2, %v475_v56  ;;  %vm520_vm3 = vcmp.ge.f32.partialorder %v475_v56, 0.0 }
  0xee   : > { %v479_v60 = vadd.f32 %v478_v58, %v342_v57  ;;  %v480_v61 = vpop.f32.mrb[3].mxu0  ;;  %v551_v7 = vsel %vm519_vm2, %v473_v54, %v535_v59  ;;  %v372_v54 = vpop.permute.xlu1 %371  ;;  %vm631_vm2 = vcmask 523264  }
  0xef   : > { %v481_v0 = vadd.f32 %v480_v61, %v342_v57  ;;  %v552_v10 = vsel %vm520_vm3, %v475_v56, %v536_v63 }
  0xf0   : > { %v537_v2 = vmul.f32 0.2, %v479_v60  ;;  %vm521_vm4 = vcmp.ge.f32.partialorder %v479_v60, 0.0 }
  0xf1   : > { %v538_v3 = vmul.f32 0.2, %v481_v0  ;;  %v484_v4 = vpop.f32.mrb[4].mxu0  ;;  %vm522_vm5 = vcmp.ge.f32.partialorder %v481_v0, 0.0 }
  0xf2   : > { %v485_v5 = vadd.f32 %v484_v4, %v347_v62  ;;  %v486_v6 = vpop.f32.mrb[5].mxu0  ;;  %v553_v8 = vsel %vm521_vm4, %v479_v60, %v537_v2 }
  0xf3   : > { %v487_v9 = vadd.f32 %v486_v6, %v347_v62  ;;  %v554_v11 = vsel %vm522_vm5, %v481_v0, %v538_v3  ;;  %v583_v12 = vpack.c.bf16 %v553_v8, %v551_v7  ;;  %v1364_v6 = vld [vmem:[%s1733_s3] sm:$0xff]   ;;  %v1365_v7 = vld [vmem:[%s1733_s3 + $0x8] sm:$0xff]   ;;  %v1366_v8 = vld [vmem:[%s1733_s3 + $0x10] sm:$0xff]  }
  0xf4   : > { %v584_v13 = vpack.c.bf16 %v554_v11, %v552_v10  ;;  %v539_v16 = vmul.f32 0.2, %v485_v5  ;;  %vm523_vm6 = vcmp.ge.f32.partialorder %v485_v5, 0.0  ;;  %v1368_v10 = vld [vmem:[%s1733_s3 + $0x20] sm:$0xff]   ;;  %v1369_v11 = vld [vmem:[%s1733_s3 + $0x28] sm:$0xff]  }
  0xf5   : > { %v490_v15 = vpop.f32.mrb[6].mxu0  ;;  %v540_v19 = vmul.f32 0.2, %v487_v9  ;;  %vm524_vm7 = vcmp.ge.f32.partialorder %v487_v9, 0.0 }
  0xf6   : > { %v491_v17 = vadd.f32 %v490_v15, %v352_v14  ;;  %v492_v18 = vpop.f32.mrb[7].mxu0  ;;  %656 = vmatprep.subr.bf16.mxu1 %v584_v13  ;;  %v555_v27 = vsel %vm523_vm6, %v485_v5, %v539_v16  ;;  %v1371_v13 = vld [vmem:[%s1733_s3 + $0x38] sm:$0xff]   ;;  %v793_v15 = vpop.permute.xlu1 %792 }
  0xf7   : > { %v493_v20 = vadd.f32 %v492_v18, %v352_v14  ;;  %657 = vmatpush1.bf16.msra.mxu1 %v583_v12  ;;  %v556_v30 = vsel %vm524_vm7, %v487_v9, %v540_v19  ;;  %v1367_v9 = vld [vmem:[%s1733_s3 + $0x18] sm:$0xff]   ;;  %v1370_v12 = vld [vmem:[%s1733_s3 + $0x30] sm:$0xff]   ;;  %v788_v14 = vpop.permute.xlu0 %787 }
  0xf8   : > { %vm525_vm8 = vcmp.ge.f32.partialorder %v491_v17, 0.0  ;;  %v541_v21 = vmul.f32 0.2, %v491_v17 }
  0xf9   : > { %vm526_vm9 = vcmp.ge.f32.partialorder %v493_v20, 0.0  ;;  %v542_v23 = vmul.f32 0.2, %v493_v20  ;;  %v496_v24 = vpop.f32.mrb[8].mxu0 }
  0xfa   : > { %v497_v25 = vadd.f32 %v496_v24, %v357_v22  ;;  %v498_v26 = vpop.f32.mrb[9].mxu0  ;;  %v557_v28 = vsel %vm525_vm8, %v491_v17, %v541_v21  ;;  %v921_v17 = vpop.permute.xlu1 %920 }
  0xfb   : > { %v499_v29 = vadd.f32 %v498_v26, %v357_v22  ;;  %v558_v31 = vsel %vm526_vm9, %v493_v20, %v542_v23  ;;  %v585_v32 = vpack.c.bf16 %v557_v28, %v555_v27  ;;  %v916_v16 = vpop.permute.xlu0 %915 }
  0xfc   : > { %v586_v33 = vpack.c.bf16 %v558_v31, %v556_v30  ;;  %v543_v36 = vmul.f32 0.2, %v497_v25  ;;  %vm527_vm10 = vcmp.ge.f32.partialorder %v497_v25, 0.0 }
  0xfd   : > { %v502_v35 = vpop.f32.mrb[10].mxu0  ;;  %v544_v39 = vmul.f32 0.2, %v499_v29  ;;  %vm528_vm11 = vcmp.ge.f32.partialorder %v499_v29, 0.0 }
  0xfe   : > { %v503_v37 = vadd.f32 %v502_v35, %v362_v34  ;;  %v504_v38 = vpop.f32.mrb[11].mxu0  ;;  %658 = vmatprep.subr.bf16.mxu1 %v586_v33  ;;  %v559_v47 = vsel %vm527_vm10, %v497_v25, %v543_v36  ;;  %v803_v19 = vpop.permute.xlu1 %802 }
  0xff   : > { %v505_v40 = vadd.f32 %v504_v38, %v362_v34  ;;  %659 = vmatpush1.bf16.msra.mxu1 %v585_v32  ;;  %v560_v50 = vsel %vm528_vm11, %v499_v29, %v544_v39  ;;  %v798_v18 = vpop.permute.xlu0 %797 }
 0x100   : > { %vm529_vm12 = vcmp.ge.f32.partialorder %v503_v37, 0.0  ;;  %v545_v41 = vmul.f32 0.2, %v503_v37 }
 0x101   : > { %vm530_vm13 = vcmp.ge.f32.partialorder %v505_v40, 0.0  ;;  %v546_v43 = vmul.f32 0.2, %v505_v40  ;;  %v508_v44 = vpop.f32.mrb[12].mxu0 }
 0x102   : > { %v509_v45 = vadd.f32 %v508_v44, %v367_v42  ;;  %v510_v46 = vpop.f32.mrb[13].mxu0  ;;  %v561_v48 = vsel %vm529_vm12, %v503_v37, %v545_v41  ;;  %v931_v21 = vpop.permute.xlu1 %930 }
 0x103   : > { %v511_v49 = vadd.f32 %v510_v46, %v367_v42  ;;  %v562_v51 = vsel %vm530_vm13, %v505_v40, %v546_v43  ;;  %v587_v52 = vpack.c.bf16 %v561_v48, %v559_v47  ;;  %v926_v20 = vpop.permute.xlu0 %925 }
 0x104   : > { %v588_v53 = vpack.c.bf16 %v562_v51, %v560_v50  ;;  %v547_v56 = vmul.f32 0.2, %v509_v45  ;;  %vm531_vm14 = vcmp.ge.f32.partialorder %v509_v45, 0.0 }
 0x105   : > { %v514_v55 = vpop.f32.mrb[14].mxu0  ;;  %v548_v59 = vmul.f32 0.2, %v511_v49  ;;  %vm532_vm15 = vcmp.ge.f32.partialorder %v511_v49, 0.0 }
 0x106   : > { %v515_v57 = vadd.f32 %v514_v55, %v372_v54  ;;  %v516_v58 = vpop.f32.mrb[15].mxu0  ;;  %660 = vmatprep.subr.bf16.mxu1 %v588_v53  ;;  %v563_v63 = vsel %vm531_vm14, %v509_v45, %v547_v56  ;;  %v1676_v23 = vpop.permute.xlu1 %812 }
 0x107   : > { %v517_v60 = vadd.f32 %v516_v58, %v372_v54  ;;  %661 = vmatpush1.bf16.msra.mxu1 %v587_v52  ;;  %v564_v2 = vsel %vm532_vm15, %v511_v49, %v548_v59  ;;  %v1674_v22 = vpop.permute.xlu0 %807 }
 0x108   : > { %vm533_vm0 = vcmp.ge.f32.partialorder %v515_v57, 0.0  ;;  %v549_v61 = vmul.f32 0.2, %v515_v57 }
 0x109   : > { %vm534_vm1 = vcmp.ge.f32.partialorder %v517_v60, 0.0  ;;  %v550_v62 = vmul.f32 0.2, %v517_v60 }
 0x10a   : > { %v565_v0 = vsel %vm533_vm0, %v515_v57, %v549_v61 }
 0x10b   : > { %v566_v3 = vsel %vm534_vm1, %v517_v60, %v550_v62  ;;  %v589_v4 = vpack.c.bf16 %v565_v0, %v563_v63  ;;  %v1678_v24 = vpop.permute.xlu0 %935 }
 0x10c   : > { %v590_v5 = vpack.c.bf16 %v566_v3, %v564_v2 }
 0x10e   : > { %662 = vmatprep.subr.bf16.mxu1 %v590_v5 }
 0x10f   : > { %663 = vmatpush1.bf16.msra.mxu1 %v589_v4  ;;  %v1682_v33 = vpop.permute.xlu0 %817 }
 0x112   : > { %1321 = vmatmul.mubr.msk.bf16.vlgmr.msra.gmra.mrb[0].mxu1 %vm631_vm2, %v1364_v6 }
 0x113   : > { %698 = vmatprep.mubr.bf16.mxu1 %v1405_v1  ;;  %v1686_v48 = vpop.permute.xlu0 %945 }
 0x117   : > { %v1690_v3 = vpop.permute.xlu0 %827 }
 0x11a   : > { %1322 = vmatmul.mubr.msk.bf16.gmra.mrb[4].mxu1 %vm631_vm2, %v1365_v7 }
 0x11b   : > { %708 = vmatprep.mubr.bf16.mxu1 %v1405_v1 }
 0x122   : > { %1323 = vmatmul.mubr.msk.bf16.gmra.mrb[8].mxu1 %vm631_vm2, %v1366_v8 }
 0x123   : > { %718 = vmatprep.mubr.bf16.mxu1 %v1405_v1 }
 0x12a   : > { %1324 = vmatmul.mubr.msk.bf16.gmra.mrb[12].mxu1 %vm631_vm2, %v1367_v9 }
 0x12b   : > { %728 = vmatprep.mubr.bf16.mxu1 %v1405_v1 }
 0x132   : > { %1325 = vmatmul.mubr.msk.bf16.gmra.mrb[16].mxu1 %vm631_vm2, %v1368_v10 }
 0x133   : > { %738 = vmatprep.mubr.bf16.mxu1 %v1405_v1 }
 0x13a   : > { %1326 = vmatmul.mubr.msk.bf16.gmra.mrb[20].mxu1 %vm631_vm2, %v1369_v11 }
 0x13b   : > { %748 = vmatprep.mubr.bf16.mxu1 %v1405_v1 }
 0x142   : > { %1327 = vmatmul.mubr.msk.bf16.gmra.mrb[24].mxu1 %vm631_vm2, %v1370_v12 }
 0x143   : > { %758 = vmatprep.mubr.bf16.mxu1 %v1405_v1  ;;  %v1680_v1 = vpop.permute.xlu1 %940 }
 0x147   : > { %v1684_v38 = vpop.permute.xlu1 %822 }
 0x14a   : > { %1328 = vmatmul.mubr.msk.bf16.gmra.mrb[28].mxu1 %vm631_vm2, %v1371_v13 }
 0x14b   : > { %v1688_v58 = vpop.permute.xlu1 %950 }
 0x14f   : > { %v1693_v10 = vpop.permute.xlu1 %832 }
 0x1e5   : > { %v690_v25 = vpop.f32.mrb[0].mxu1 }
 0x1e6   : > { %v865_v26 = vmul.f32 %v788_v14, %v690_v25  ;;  %v692_v27 = vpop.f32.mrb[1].mxu1 }
 0x1e7   : > { %v866_v28 = vmul.f32 %v788_v14, %v692_v27  ;;  %v694_v29 = vpop.f32.mrb[2].mxu1  ;;  %v956_v27 = vpop.permute.xlu0 %955 }
 0x1e8   : > { %v993_v30 = vadd.f32 %v916_v16, %v865_v26  ;;  %v867_v31 = vmul.f32 %v793_v15, %v694_v29  ;;  %v696_v32 = vpop.f32.mrb[3].mxu1 }
 0x1e9   : > { %v994_v34 = vadd.f32 %v916_v16, %v866_v28  ;;  %v868_v35 = vmul.f32 %v793_v15, %v696_v32 }
 0x1ea   : > { %v1057_v36 = vmul.f32 0.2, %v993_v30  ;;  %v995_v37 = vadd.f32 %v921_v17, %v867_v31  ;;  %vm1025_vm3 = vcmp.ge.f32.partialorder %v993_v30, 0.0 }
 0x1eb   : > { %v1058_v39 = vmul.f32 0.2, %v994_v34  ;;  %v996_v40 = vadd.f32 %v921_v17, %v868_v35  ;;  %vm1026_vm4 = vcmp.ge.f32.partialorder %v994_v34, 0.0 }
 0x1ec   : > { %vm1027_vm5 = vcmp.ge.f32.partialorder %v995_v37, 0.0  ;;  %v1059_v41 = vmul.f32 0.2, %v995_v37  ;;  %v1089_v44 = vsel %vm1025_vm3, %v993_v30, %v1057_v36  ;;  %v961_v30 = vpop.permute.xlu1 %960 }
 0x1ed   : > { %vm1028_vm6 = vcmp.ge.f32.partialorder %v996_v40, 0.0  ;;  %v1060_v42 = vmul.f32 0.2, %v996_v40  ;;  %v700_v43 = vpop.f32.mrb[4].mxu1  ;;  %v1090_v51 = vsel %vm1026_vm4, %v994_v34, %v1058_v39 }
 0x1ee   : > { %v1091_v45 = vsel %vm1027_vm5, %v995_v37, %v1059_v41  ;;  %v869_v46 = vmul.f32 %v798_v18, %v700_v43  ;;  %v702_v47 = vpop.f32.mrb[5].mxu1 }
 0x1ef   : > { %v870_v49 = vmul.f32 %v798_v18, %v702_v47  ;;  %v704_v50 = vpop.f32.mrb[6].mxu1  ;;  %v1092_v52 = vsel %vm1028_vm6, %v996_v40, %v1060_v42  ;;  %v1122_v53 = vpack.c.bf16 %v1091_v45, %v1089_v44  ;;  %v838_v45 = vpop.permute.xlu0 %837 }
 0x1f0   : > { %v997_v54 = vadd.f32 %v926_v20, %v869_v46  ;;  %v871_v55 = vmul.f32 %v803_v19, %v704_v50  ;;  %v706_v56 = vpop.f32.mrb[7].mxu1  ;;  %v1123_v57 = vpack.c.bf16 %v1092_v52, %v1090_v51 }
 0x1f1   : > { %v998_v59 = vadd.f32 %v926_v20, %v870_v49  ;;  %v872_v60 = vmul.f32 %v803_v19, %v706_v56 }
 0x1f2   : > { %v1061_v61 = vmul.f32 0.2, %v997_v54  ;;  %v999_v62 = vadd.f32 %v931_v21, %v871_v55  ;;  %1138 = vmatprep.subr.bf16.mxu0 %v1123_v57  ;;  %vm1029_vm7 = vcmp.ge.f32.partialorder %v997_v54, 0.0 }
 0x1f3   : > { %v1062_v63 = vmul.f32 0.2, %v998_v59  ;;  %v1000_v0 = vadd.f32 %v931_v21, %v872_v60  ;;  %1139 = vmatpush1.bf16.msra.mxu0 %v1122_v53  ;;  %vm1030_vm8 = vcmp.ge.f32.partialorder %v998_v59, 0.0 }
 0x1f4   : > { %vm1031_vm9 = vcmp.ge.f32.partialorder %v999_v62, 0.0  ;;  %v1063_v2 = vmul.f32 0.2, %v999_v62  ;;  %v1093_v6 = vsel %vm1029_vm7, %v997_v54, %v1061_v61 }
 0x1f5   : > { %vm1032_vm10 = vcmp.ge.f32.partialorder %v1000_v0, 0.0  ;;  %v1064_v4 = vmul.f32 0.2, %v1000_v0  ;;  %v710_v5 = vpop.f32.mrb[8].mxu1  ;;  %v1094_v13 = vsel %vm1030_vm8, %v998_v59, %v1062_v63  ;;  %v966_v59 = vpop.permute.xlu0 %965 }
 0x1f6   : > { %v1095_v7 = vsel %vm1031_vm9, %v999_v62, %v1063_v2  ;;  %v873_v8 = vmul.f32 %v1674_v22, %v710_v5  ;;  %v712_v9 = vpop.f32.mrb[9].mxu1 }
 0x1f7   : > { %v874_v11 = vmul.f32 %v1674_v22, %v712_v9  ;;  %v714_v12 = vpop.f32.mrb[10].mxu1  ;;  %v1096_v14 = vsel %vm1032_vm10, %v1000_v0, %v1064_v4  ;;  %v1124_v15 = vpack.c.bf16 %v1095_v7, %v1093_v6 }
 0x1f8   : > { %v1001_v16 = vadd.f32 %v1678_v24, %v873_v8  ;;  %v875_v17 = vmul.f32 %v1676_v23, %v714_v12  ;;  %v716_v18 = vpop.f32.mrb[11].mxu1  ;;  %v1125_v19 = vpack.c.bf16 %v1096_v14, %v1094_v13 }
 0x1f9   : > { %v1002_v20 = vadd.f32 %v1678_v24, %v874_v11  ;;  %v876_v21 = vmul.f32 %v1676_v23, %v716_v18  ;;  %v848_v14 = vpop.permute.xlu0 %847 }
 0x1fa   : > { %v1065_v25 = vmul.f32 0.2, %v1001_v16  ;;  %v1003_v26 = vadd.f32 %v1680_v1, %v875_v17  ;;  %1140 = vmatprep.subr.bf16.mxu0 %v1125_v19  ;;  %vm1033_vm11 = vcmp.ge.f32.partialorder %v1001_v16, 0.0 }
 0x1fb   : > { %v1066_v22 = vmul.f32 0.2, %v1002_v20  ;;  %v1004_v28 = vadd.f32 %v1680_v1, %v876_v21  ;;  %1141 = vmatpush1.bf16.msra.mxu0 %v1124_v15  ;;  %vm1034_vm12 = vcmp.ge.f32.partialorder %v1002_v20, 0.0 }
 0x1fc   : > { %vm1035_vm13 = vcmp.ge.f32.partialorder %v1003_v26, 0.0  ;;  %v1067_v29 = vmul.f32 0.2, %v1003_v26  ;;  %v1097_v24 = vsel %vm1033_vm11, %v1001_v16, %v1065_v25 }
 0x1fd   : > { %vm1036_vm14 = vcmp.ge.f32.partialorder %v1004_v28, 0.0  ;;  %v1068_v31 = vmul.f32 0.2, %v1004_v28  ;;  %v720_v32 = vpop.f32.mrb[12].mxu1  ;;  %v1098_v39 = vsel %vm1034_vm12, %v1002_v20, %v1066_v22 }
 0x1fe   : > { %v1099_v34 = vsel %vm1035_vm13, %v1003_v26, %v1067_v29  ;;  %v877_v23 = vmul.f32 %v1682_v33, %v720_v32  ;;  %v722_v35 = vpop.f32.mrb[13].mxu1 }
 0x1ff   : > { %v878_v36 = vmul.f32 %v1682_v33, %v722_v35  ;;  %v724_v37 = vpop.f32.mrb[14].mxu1  ;;  %v1100_v40 = vsel %vm1036_vm14, %v1004_v28, %v1068_v31  ;;  %v1126_v41 = vpack.c.bf16 %v1099_v34, %v1097_v24  ;;  %v843_v33 = vpop.permute.xlu1 %842 }
 0x200   : > { %v1005_v1 = vadd.f32 %v1686_v48, %v877_v23  ;;  %v879_v42 = vmul.f32 %v1684_v38, %v724_v37  ;;  %v726_v43 = vpop.f32.mrb[15].mxu1  ;;  %v1127_v44 = vpack.c.bf16 %v1100_v40, %v1098_v39  ;;  %v976_v35 = vpop.permute.xlu0 %975 }
 0x201   : > { %v1006_v46 = vadd.f32 %v1686_v48, %v878_v36  ;;  %v880_v47 = vmul.f32 %v1684_v38, %v726_v43 }
 0x202   : > { %v1069_v49 = vmul.f32 0.2, %v1005_v1  ;;  %v1007_v50 = vadd.f32 %v1688_v58, %v879_v42  ;;  %1142 = vmatprep.subr.bf16.mxu0 %v1127_v44  ;;  %vm1037_vm15 = vcmp.ge.f32.partialorder %v1005_v1, 0.0 }
 0x203   : > { %v1070_v51 = vmul.f32 0.2, %v1006_v46  ;;  %v1008_v52 = vadd.f32 %v1688_v58, %v880_v47  ;;  %1143 = vmatpush1.bf16.msra.mxu0 %v1126_v41  ;;  %vm1038_vm0 = vcmp.ge.f32.partialorder %v1006_v46, 0.0  ;;  %v971_v6 = vpop.permute.xlu1 %970 }
 0x204   : > { %vm1039_vm1 = vcmp.ge.f32.partialorder %v1007_v50, 0.0  ;;  %v1071_v53 = vmul.f32 0.2, %v1007_v50  ;;  %v1101_v56 = vsel %vm1037_vm15, %v1005_v1, %v1069_v49 }
 0x205   : > { %vm1040_vm2 = vcmp.ge.f32.partialorder %v1008_v52, 0.0  ;;  %v1072_v54 = vmul.f32 0.2, %v1008_v52  ;;  %v730_v55 = vpop.f32.mrb[16].mxu1  ;;  %v1102_v62 = vsel %vm1038_vm0, %v1006_v46, %v1070_v51 }
 0x206   : > { %v1103_v48 = vsel %vm1039_vm1, %v1007_v50, %v1071_v53  ;;  %v881_v38 = vmul.f32 %v1690_v3, %v730_v55  ;;  %v732_v57 = vpop.f32.mrb[17].mxu1  ;;  %v858_v55 = vpop.permute.xlu0 %857 }
 0x207   : > { %v882_v60 = vmul.f32 %v1690_v3, %v732_v57  ;;  %v734_v61 = vpop.f32.mrb[18].mxu1  ;;  %v1104_v63 = vsel %vm1040_vm2, %v1008_v52, %v1072_v54  ;;  %v1128_v0 = vpack.c.bf16 %v1103_v48, %v1101_v56  ;;  %v853_v21 = vpop.permute.xlu1 %852 }
 0x208   : > { %v1009_v58 = vadd.f32 %v956_v27, %v881_v38  ;;  %v883_v2 = vmul.f32 %v1693_v10, %v734_v61  ;;  %v736_v4 = vpop.f32.mrb[19].mxu1  ;;  %v1129_v5 = vpack.c.bf16 %v1104_v63, %v1102_v62 }
 0x209   : > { %v1010_v7 = vadd.f32 %v956_v27, %v882_v60  ;;  %v884_v8 = vmul.f32 %v1693_v10, %v736_v4 }
 0x20a   : > { %v1073_v9 = vmul.f32 0.2, %v1009_v58  ;;  %v1011_v11 = vadd.f32 %v961_v30, %v883_v2  ;;  %1144 = vmatprep.subr.bf16.mxu0 %v1129_v5  ;;  %vm1041_vm3 = vcmp.ge.f32.partialorder %v1009_v58, 0.0 }
 0x20b   : > { %v1074_v12 = vmul.f32 0.2, %v1010_v7  ;;  %v1012_v13 = vadd.f32 %v961_v30, %v884_v8  ;;  %1145 = vmatpush1.bf16.msra.mxu0 %v1128_v0  ;;  %vm1042_vm4 = vcmp.ge.f32.partialorder %v1010_v7, 0.0  ;;  %v981_v40 = vpop.permute.xlu1 %980 }
 0x20c   : > { %vm1043_vm5 = vcmp.ge.f32.partialorder %v1011_v11, 0.0  ;;  %v1075_v3 = vmul.f32 0.2, %v1011_v11  ;;  %v1105_v17 = vsel %vm1041_vm3, %v1009_v58, %v1073_v9 }
 0x20d   : > { %vm1044_vm6 = vcmp.ge.f32.partialorder %v1012_v13, 0.0  ;;  %v1076_v15 = vmul.f32 0.2, %v1012_v13  ;;  %v740_v16 = vpop.f32.mrb[20].mxu1  ;;  %v1106_v26 = vsel %vm1042_vm4, %v1010_v7, %v1074_v12 }
 0x20e   : > { %v1107_v18 = vsel %vm1043_vm5, %v1011_v11, %v1075_v3  ;;  %v885_v19 = vmul.f32 %v838_v45, %v740_v16  ;;  %v742_v20 = vpop.f32.mrb[21].mxu1 }
 0x20f   : > { %v886_v10 = vmul.f32 %v838_v45, %v742_v20  ;;  %v744_v25 = vpop.f32.mrb[22].mxu1  ;;  %v1108_v27 = vsel %vm1044_vm6, %v1012_v13, %v1076_v15  ;;  %v1130_v22 = vpack.c.bf16 %v1107_v18, %v1105_v17 }
 0x210   : > { %v1013_v28 = vadd.f32 %v966_v59, %v885_v19  ;;  %v887_v29 = vmul.f32 %v843_v33, %v744_v25  ;;  %v746_v30 = vpop.f32.mrb[23].mxu1  ;;  %v1131_v31 = vpack.c.bf16 %v1108_v27, %v1106_v26 }
 0x211   : > { %v1014_v32 = vadd.f32 %v966_v59, %v886_v10  ;;  %v888_v24 = vmul.f32 %v843_v33, %v746_v30  ;;  %v863_v59 = vpop.permute.xlu1 %862 }
 0x212   : > { %v1077_v34 = vmul.f32 0.2, %v1013_v28  ;;  %v1015_v23 = vadd.f32 %v971_v6, %v887_v29  ;;  %1146 = vmatprep.subr.bf16.mxu0 %v1131_v31  ;;  %vm1045_vm7 = vcmp.ge.f32.partialorder %v1013_v28, 0.0 }
 0x213   : > { %v1078_v36 = vmul.f32 0.2, %v1014_v32  ;;  %v1016_v37 = vadd.f32 %v971_v6, %v888_v24  ;;  %1147 = vmatpush1.bf16.msra.mxu0 %v1130_v22  ;;  %vm1046_vm8 = vcmp.ge.f32.partialorder %v1014_v32, 0.0  ;;  %v986_v6 = vpop.permute.xlu0 %985 }
 0x214   : > { %vm1047_vm9 = vcmp.ge.f32.partialorder %v1015_v23, 0.0  ;;  %v1079_v39 = vmul.f32 0.2, %v1015_v23  ;;  %v1109_v42 = vsel %vm1045_vm7, %v1013_v28, %v1077_v34 }
 0x215   : > { %vm1048_vm10 = vcmp.ge.f32.partialorder %v1016_v37, 0.0  ;;  %v1080_v41 = vmul.f32 0.2, %v1016_v37  ;;  %v750_v1 = vpop.f32.mrb[24].mxu1  ;;  %v1110_v49 = vsel %vm1046_vm8, %v1014_v32, %v1078_v36  ;;  %v991_v16 = vpop.permute.xlu1 %990  ;;  %v1121_v32 = vld [vmem:[%s1736_s6] sm:$0x1] }
 0x216   : > { %v1111_v43 = vsel %vm1047_vm9, %v1015_v23, %v1079_v39  ;;  %v889_v44 = vmul.f32 %v848_v14, %v750_v1  ;;  %v752_v45 = vpop.f32.mrb[25].mxu1 }
 0x217   : > { %v890_v46 = vmul.f32 %v848_v14, %v752_v45  ;;  %v754_v47 = vpop.f32.mrb[26].mxu1  ;;  %v1112_v50 = vsel %vm1048_vm10, %v1016_v37, %v1080_v41  ;;  %v1132_v33 = vpack.c.bf16 %v1111_v43, %v1109_v42  ;;  %v1406_v42 = vmov 1966171168  }
 0x218   : > { %v1017_v51 = vadd.f32 %v976_v35, %v889_v44  ;;  %v891_v52 = vmul.f32 %v853_v21, %v754_v47  ;;  %v756_v53 = vpop.f32.mrb[27].mxu1  ;;  %v1133_v54 = vpack.c.bf16 %v1112_v50, %v1110_v49  ;;  %v1195_v43 = vunpack.c.l.s4 %v1406_v42 }
 0x219   : > { %v1018_v56 = vadd.f32 %v976_v35, %v890_v46  ;;  %v892_v48 = vmul.f32 %v853_v21, %v756_v53  ;;  %v1197_v44 = vlaneseq }
 0x21a   : > { %v1081_v38 = vmul.f32 0.2, %v1017_v51  ;;  %v1019_v57 = vadd.f32 %v981_v40, %v891_v52  ;;  %1148 = vmatprep.subr.bf16.mxu0 %v1133_v54  ;;  %vm1049_vm11 = vcmp.ge.f32.partialorder %v1017_v51, 0.0  ;;  %v1196_v45 = vunpack.c.0.s8 %v1195_v43 }
 0x21b   : > { %v1082_v60 = vmul.f32 0.2, %v1018_v56  ;;  %v1020_v61 = vadd.f32 %v981_v40, %v892_v48  ;;  %1149 = vmatpush1.bf16.msra.mxu0 %v1132_v33  ;;  %vm1050_vm12 = vcmp.ge.f32.partialorder %v1018_v56, 0.0  ;;  %v1198_v46 = vshrl.u32 %v1197_v44, 7 }
 0x21c   : > { %vm1051_vm13 = vcmp.ge.f32.partialorder %v1019_v57, 0.0  ;;  %v1083_v62 = vmul.f32 0.2, %v1019_v57  ;;  %v1113_v58 = vsel %vm1049_vm11, %v1017_v51, %v1081_v38  ;;  %vm1211_vm3 = vcmp.lt.s32.totalorder %v1197_v44, 256 }
 0x21d   : > { %vm1052_vm14 = vcmp.ge.f32.partialorder %v1020_v61, 0.0  ;;  %v1084_v63 = vmul.f32 0.2, %v1020_v61  ;;  %v760_v0 = vpop.f32.mrb[28].mxu1  ;;  %v1114_v9 = vsel %vm1050_vm12, %v1018_v56, %v1082_v60  ;;  %v1199_v49 = vsub.s32 %v1196_v45, %v1198_v46 }
 0x21e   : > { %v1115_v2 = vsel %vm1051_vm13, %v1019_v57, %v1083_v62  ;;  %v893_v4 = vmul.f32 %v858_v55, %v760_v0  ;;  %v762_v5 = vpop.f32.mrb[29].mxu1 }
 0x21f   : > { %v894_v7 = vmul.f32 %v858_v55, %v762_v5  ;;  %v764_v8 = vpop.f32.mrb[30].mxu1  ;;  %v1116_v11 = vsel %vm1052_vm14, %v1020_v61, %v1084_v63  ;;  %v1134_v12 = vpack.c.bf16 %v1115_v2, %v1113_v58 }
 0x220   : > { %v1021_v13 = vadd.f32 %v986_v6, %v893_v4  ;;  %v895_v3 = vmul.f32 %v863_v59, %v764_v8  ;;  %v766_v14 = vpop.f32.mrb[31].mxu1  ;;  %v1135_v15 = vpack.c.bf16 %v1116_v11, %v1114_v9 }
 0x221   : > { %v1022_v17 = vadd.f32 %v986_v6, %v894_v7  ;;  %v896_v18 = vmul.f32 %v863_v59, %v766_v14 }
 0x222   : > { %v1085_v19 = vmul.f32 0.2, %v1021_v13  ;;  %v1023_v20 = vadd.f32 %v991_v16, %v895_v3  ;;  %1150 = vmatprep.subr.bf16.mxu0 %v1135_v15  ;;  %vm1053_vm15 = vcmp.ge.f32.partialorder %v1021_v13, 0.0 }
 0x223   : > { %v1086_v21 = vmul.f32 0.2, %v1022_v17  ;;  %v1024_v10 = vadd.f32 %v991_v16, %v896_v18  ;;  %1151 = vmatpush1.bf16.msra.mxu0 %v1134_v12  ;;  %vm1054_vm0 = vcmp.ge.f32.partialorder %v1022_v17, 0.0 }
 0x224   : > { %vm1055_vm1 = vcmp.ge.f32.partialorder %v1023_v20, 0.0  ;;  %v1087_v25 = vmul.f32 0.2, %v1023_v20  ;;  %v1117_v27 = vsel %vm1053_vm15, %v1021_v13, %v1085_v19 }
 0x225   : > { %vm1056_vm2 = vcmp.ge.f32.partialorder %v1024_v10, 0.0  ;;  %v1088_v26 = vmul.f32 0.2, %v1024_v10  ;;  %v1118_v28 = vsel %vm1054_vm0, %v1022_v17, %v1086_v21 }
 0x226   : > { %v1119_v22 = vsel %vm1055_vm1, %v1023_v20, %v1087_v25 }
 0x227   : > { %v1120_v29 = vsel %vm1056_vm2, %v1024_v10, %v1088_v26  ;;  %v1136_v30 = vpack.c.bf16 %v1119_v22, %v1117_v27 }
 0x228   : > { %v1137_v31 = vpack.c.bf16 %v1120_v29, %v1118_v28 }
 0x22a   : > { %1152 = vmatprep.subr.bf16.mxu0 %v1137_v31 }
 0x22b   : > { %1153 = vmatpush1.bf16.msra.mxu0 %v1136_v30 }
 0x22e   : > { %1171 = vmatmul.mubr.bf16.vlgmr.msra.gmra.mrb[16].mxu0 %v1121_v32 }
 0x301   : > { %v1172_v24 = vpop.f32.mrb[16].mxu0 }
 0x302   : > { %v1329_v34 = vmul.f32 -1.442695, %v1172_v24  ;;  %v1174_v23 = vpop.f32.mrb[17].mxu0 }
 0x303   : > { %v1330_v35 = vmul.f32 -1.442695, %v1174_v23  ;;  %v1176_v36 = vpop.f32.mrb[18].mxu0 }
 0x304   : > { %1372 = vpow2.f32 %v1329_v34  ;;  %v1177_v37 = vpop.f32.mrb[19].mxu0 }
 0x305   : > { %1374 = vpow2.f32 %v1330_v35 }
 0x30e   : > { %v1373_v39 = vpop.eup %1372 }
 0x30f   : > { %v1375_v40 = vpop.eup %1374  ;;  %v1185_v41 = vadd.f32 1.0, %v1373_v39 }
 0x310   : > { %v1186_v1 = vadd.f32 1.0, %v1375_v40 }
 0x311   : > { %1376 = vrcp.f32 %v1185_v41 }
 0x312   : > { %1378 = vrcp.f32 %v1186_v1 }
 0x31b   : > { %v1377_v47 = vpop.eup %1376 }
 0x31c   : > { %v1379_v50 = vpop.eup %1378 }
 0x31d   : > { %v1193_v33 = vcombine.low %v1377_v47, %v1379_v50 }
 0x31f   : > { %v1200_v51 = vrot.slane %v1193_v33, %v1199_v49 }
 0x321   : > { %v1207_v52 = vrot.slane %v1200_v51, %v1199_v49 }
 0x323   : > { %1213 = vst.msk [vmem:[%s314_s12] sm:$0x3] %vm1211_vm3, %v1207_v52 }
 0x324 PF: > { %s17_s26 = sadd.s32 1, %s1402_s26   ;;  %s1738_s24 = smov %s1398_s25 }
 0x325   : > { %p14_p5 = scmp.ge.s32.totalorder %s17_s26, 4   ;;  %s1739_s25 = smov %s1741_s27 }
 0x327   :  { %16 = sbr.rel (!%p14_p5) target bundleno = 2 (0x2), region = 78 }

</bundles_post_ra>
